<compile_context>
chip_gen: v7x
topology: tpu7x:2x2x1
jax: 0.10.0
libtpu: 0.0.40
codegen_flags: <defaults>
</compile_context>

<pallas_src>
import jax
import jax.numpy as jnp
from jax.experimental import pallas as pl
from jax.experimental.pallas import tpu as pltpu


def _round_up(x, m):
    return ((x + m - 1) // m) * m


# ----------------------------- Pallas kernel --------------------------------
def qnetwork_fused_kernel(state_ref, action_ref, w1s_ref, w1a_ref, b1_ref,
                          w2_ref, b2_ref, w3_ref, b3_ref, q_ref):
    f32 = jnp.float32
    q_heads = []
    for head in range(2):  # static Python loop -> unrolled twin heads
        h = jnp.dot(state_ref[...], w1s_ref[head], preferred_element_type=f32)
        h = h + jnp.dot(action_ref[...], w1a_ref[head],
                        preferred_element_type=f32)
        h = jnp.maximum(h + b1_ref[head].astype(f32), 0.0)
        h = h.astype(w2_ref.dtype)
        h = jnp.maximum(
            jnp.dot(h, w2_ref[head], preferred_element_type=f32)
            + b2_ref[head].astype(f32), 0.0)
        h = h.astype(w3_ref.dtype)
        q = (jnp.dot(h, w3_ref[head], preferred_element_type=f32)
             + b3_ref[head].astype(f32))
        q_heads.append(q)  # [block_b, 1] f32

    # Lane-dense output: put q1/q2 in lanes 0/1 of a lane-aligned buffer, then
    # transpose so the batch axis becomes the dense lane axis of the store.
    lane = jax.lax.broadcasted_iota(jnp.int32, (1, 128), 1)
    q_pad = (jnp.where(lane == 0, q_heads[0], 0.0)
             + jnp.where(lane == 1, q_heads[1], 0.0))        # [block_b, 128]
    q_t = jnp.transpose(q_pad, (1, 0))                        # [128, block_b]
    q_ref[...] = q_t[0:2, :].astype(q_ref.dtype)              # dense [2, block_b]


# ----------------------------- param packing --------------------------------
def pack_qnetwork_params(params, obs_dim, dtype=jnp.float32):
    """12 per-head arrays -> 7 head-stacked arrays (done once, outside kernel).

    Weights are optionally stored in bf16 (dtype arg); biases stay f32 since
    they are added to the f32 accumulator.
    """
    (w1a, b1a, w2a, b2a, w3a, b3a,
     w1b, b1b, w2b, b2b, w3b, b3b) = params
    w1s = jnp.stack([w1a[:obs_dim], w1b[:obs_dim]]).astype(dtype)   # [2, obs, H1]
    w1ac = jnp.stack([w1a[obs_dim:], w1b[obs_dim:]]).astype(dtype)  # [2, act, H1]
    b1 = jnp.stack([b1a, b1b]).astype(jnp.float32)                  # [2, 1, H1]
    w2 = jnp.stack([w2a, w2b]).astype(dtype)                        # [2, H1, H2]
    b2 = jnp.stack([b2a, b2b]).astype(jnp.float32)                  # [2, 1, H2]
    w3 = jnp.stack([w3a, w3b]).astype(dtype)                        # [2, H2, 1]
    b3 = jnp.stack([b3a, b3b]).astype(jnp.float32)                  # [2, 1, 1]
    return (w1s, w1ac, b1, w2, b2, w3, b3)


# ------------------------------- wrapper -------------------------------------
def qnetwork_forward(state, action, packed_params, *, block_b=None):
    w1s, w1a, b1, w2, b2, w3, b3 = packed_params
    B = state.shape[0]
    obs_dim = state.shape[1]
    act_dim = action.shape[1]
    h1 = w1s.shape[2]
    h2 = w2.shape[2]
    compute_dtype = w2.dtype

    # Activations carried in the weight dtype (bf16 halves activation DMA too).
    state = state.astype(compute_dtype)
    action = action.astype(compute_dtype)

    # Batch tiling: big row tiles (multiple of 128 so the lane-dense transposed
    # output stays aligned); >=2 blocks when the batch allows it so the
    # "parallel" batch axis can use both TensorCores on v7x.
    if block_b is None:
        block_b = min(1024, max(128, _round_up(B, 128) // 2))
    block_b = max(128, _round_up(block_b, 128))
    padded_b = _round_up(max(B, block_b), block_b)
    if padded_b != B:
        state = jnp.pad(state, ((0, padded_b - B), (0, 0)))
        action = jnp.pad(action, ((0, padded_b - B), (0, 0)))

    grid = (padded_b // block_b,)

    weight_bytes = int(sum(a.size * a.dtype.itemsize for a in packed_params))
    cost = pl.CostEstimate(
        flops=2 * 2 * padded_b * (obs_dim * h1 + act_dim * h1 + h1 * h2 + h2),
        transcendentals=0,
        bytes_accessed=int(padded_b * (obs_dim + act_dim)
                           * state.dtype.itemsize)
                       + weight_bytes + padded_b * 2 * 4,
    )

    q_t = pl.pallas_call(
        qnetwork_fused_kernel,
        out_shape=jax.ShapeDtypeStruct((2, padded_b), jnp.float32),
        grid=grid,
        in_specs=[
            pl.BlockSpec((block_b, obs_dim), lambda i: (i, 0)),   # state tile
            pl.BlockSpec((block_b, act_dim), lambda i: (i, 0)),   # action tile
            pl.BlockSpec((2, obs_dim, h1), lambda i: (0, 0, 0)),  # W1 (state rows)
            pl.BlockSpec((2, act_dim, h1), lambda i: (0, 0, 0)),  # W1 (action rows)
            pl.BlockSpec((2, 1, h1), lambda i: (0, 0, 0)),        # b1
            pl.BlockSpec((2, h1, h2), lambda i: (0, 0, 0)),       # W2 (per head)
            pl.BlockSpec((2, 1, h2), lambda i: (0, 0, 0)),        # b2
            pl.BlockSpec((2, h2, 1), lambda i: (0, 0, 0)),        # W3 (per head)
            pl.BlockSpec((2, 1, 1), lambda i: (0, 0, 0)),         # b3
        ],
        out_specs=pl.BlockSpec((2, block_b), lambda i: (0, i)),   # lane-dense q
        compiler_params=pltpu.CompilerParams(
            dimension_semantics=("parallel",),
            vmem_limit_bytes=32 * 1024 * 1024),
        cost_estimate=cost,
    )(state, action, w1s, w1a, b1, w2, b2, w3, b3)

    q1 = q_t[0, :B][:, None]
    q2 = q_t[1, :B][:, None]
    return q1, q2


# --------------------------- deterministic init -------------------------------
def xavier_uniform(key, fan_in, fan_out, gain=1.0):
    # Matches torch.nn.init.xavier_uniform_ semantics.
    limit = gain * jnp.sqrt(6.0 / (fan_in + fan_out))
    return jax.random.uniform(
        key, (fan_in, fan_out), minval=-limit, maxval=limit, dtype=jnp.float32)


def init_qnetwork_params(key, obs_dim, action_dim, hidden_dim=(256, 256)):
    in_dim = obs_dim + action_dim
    dims = [(in_dim, hidden_dim[0]), (hidden_dim[0], hidden_dim[1]),
            (hidden_dim[1], 1)]
    keys = jax.random.split(key, 6)
    params = []
    # Q1 head then Q2 head: (w, b) x 3 each, biases zero (constant_(bias, 0)).
    for head in range(2):
        for li, (fi, fo) in enumerate(dims):
            w = xavier_uniform(keys[head * 3 + li], fi, fo)
            b = jnp.zeros((1, fo), dtype=jnp.float32)
            params.extend([w, b])
    return params


# ------------------------------- reference -----------------------------------
def qnetwork_reference(state, action, params):
    x = jnp.concatenate([state, action], axis=1)
    (w1a, b1a, w2a, b2a, w3a, b3a,
     w1b, b1b, w2b, b2b, w3b, b3b) = params

    def mlp(x, w1, b1, w2, b2, w3, b3):
        h = jax.nn.relu(x @ w1 + b1)
        h = jax.nn.relu(h @ w2 + b2)
        return h @ w3 + b3

    return (mlp(x, w1a, b1a, w2a, b2a, w3a, b3a),
            mlp(x, w1b, b1b, w2b, b2b, w3b, b3b))


# --------------------------------- main ---------------------------------------
if __name__ == "__main__":
    B, OBS_DIM, ACT_DIM = 256, 12, 4
    HIDDEN = (32, 32)

    key = jax.random.PRNGKey(0)
    k_params, k_state, k_action = jax.random.split(key, 3)

    params = init_qnetwork_params(k_params, OBS_DIM, ACT_DIM, HIDDEN)
    state = jax.random.normal(k_state, (B, OBS_DIM), dtype=jnp.float32)
    action = jax.random.normal(k_action, (B, ACT_DIM), dtype=jnp.float32)

    q1_ref, q2_ref = qnetwork_reference(state, action, params)

    # --- f32 weights (default, exact-parity path). grid=(2,) at B=256, which
    # exercises the batch grid and the 2-TensorCore split on v7x. -------------
    packed_f32 = pack_qnetwork_params(params, OBS_DIM, jnp.float32)
    q1, q2 = qnetwork_forward(state, action, packed_f32)
    jax.block_until_ready((q1, q2))
    assert q1.shape == (B, 1) and q2.shape == (B, 1)
    assert jnp.allclose(q1, q1_ref, atol=1e-4, rtol=1e-4)
    assert jnp.allclose(q2, q2_ref, atol=1e-4, rtol=1e-4)

    # --- bf16 weights/activations with f32 accumulation (halves DMA bytes on
    # v6e/v7x); looser tolerance as noted in the review. ----------------------
    packed_bf16 = pack_qnetwork_params(params, OBS_DIM, jnp.bfloat16)
    q1b, q2b = qnetwork_forward(state, action, packed_bf16)
    jax.block_until_ready((q1b, q2b))
    assert float(jnp.max(jnp.abs(q1b - q1_ref))) < 0.1
    assert float(jnp.max(jnp.abs(q2b - q2_ref))) < 0.1

    print("KERNEL_OK")
</pallas_src>

<mosaic_0001>
module attributes {stable_mosaic.version = 11 : i64} {
  func.func @qnetwork_fused_kernel(%arg0: i32, %arg1: memref<128x12xf32, #tpu.memory_space<vmem>>, %arg2: memref<128x4xf32, #tpu.memory_space<vmem>>, %arg3: memref<2x12x32xf32, #tpu.memory_space<vmem>>, %arg4: memref<2x4x32xf32, #tpu.memory_space<vmem>>, %arg5: memref<2x1x32xf32, #tpu.memory_space<vmem>>, %arg6: memref<2x32x32xf32, #tpu.memory_space<vmem>>, %arg7: memref<2x1x32xf32, #tpu.memory_space<vmem>>, %arg8: memref<2x32x1xf32, #tpu.memory_space<vmem>>, %arg9: memref<2x1x1xf32, #tpu.memory_space<vmem>>, %arg10: memref<2x128xf32, #tpu.memory_space<vmem>>) attributes {dimension_semantics = [#tpu.dimension_semantics<parallel>], iteration_bounds = array<i64: 2>, scalar_prefetch = 0 : i64, scratch_operands = 0 : i64, tpu.core_type = #tpu.core_type<tc>, window_params = [{transform_indices = @transform_0, window_bounds = array<i64: 128, 12>}, {transform_indices = @transform_1, window_bounds = array<i64: 128, 4>}, {pipeline_mode = #tpu.pipeline_mode<synchronous>, transform_indices = @transform_2, window_bounds = array<i64: 2, 12, 32>}, {pipeline_mode = #tpu.pipeline_mode<synchronous>, transform_indices = @transform_3, window_bounds = array<i64: 2, 4, 32>}, {pipeline_mode = #tpu.pipeline_mode<synchronous>, transform_indices = @transform_4, window_bounds = array<i64: 2, 1, 32>}, {pipeline_mode = #tpu.pipeline_mode<synchronous>, transform_indices = @transform_5, window_bounds = array<i64: 2, 32, 32>}, {pipeline_mode = #tpu.pipeline_mode<synchronous>, transform_indices = @transform_6, window_bounds = array<i64: 2, 1, 32>}, {pipeline_mode = #tpu.pipeline_mode<synchronous>, transform_indices = @transform_7, window_bounds = array<i64: 2, 32, 1>}, {pipeline_mode = #tpu.pipeline_mode<synchronous>, transform_indices = @transform_8, window_bounds = array<i64: 2, 1, 1>}, {transform_indices = @transform_9, window_bounds = array<i64: 2, 128>}]} {
    %c0 = arith.constant 0 : index
    %c0_0 = arith.constant 0 : index
    %0 = vector.load %arg1[%c0, %c0_0] : memref<128x12xf32, #tpu.memory_space<vmem>>, vector<128x12xf32>
    %c0_1 = arith.constant 0 : index
    %c0_2 = arith.constant 0 : index
    %c0_3 = arith.constant 0 : index
    %1 = vector.load %arg3[%c0_1, %c0_2, %c0_3] : memref<2x12x32xf32, #tpu.memory_space<vmem>>, vector<1x12x32xf32>
    %2 = vector.shape_cast %1 : vector<1x12x32xf32> to vector<12x32xf32>
    %cst = arith.constant dense<0.000000e+00> : vector<128x32xf32>
    %3 = tpu.matmul %0, %2, %cst {dimension_numbers = #tpu.dot_dimension_numbers<[1], [0], [0], [1], [0, 0, 1, 1], [], []>} : vector<128x12xf32>, vector<12x32xf32>, vector<128x32xf32> -> vector<128x32xf32>
    %c0_4 = arith.constant 0 : index
    %c0_5 = arith.constant 0 : index
    %4 = vector.load %arg2[%c0_4, %c0_5] : memref<128x4xf32, #tpu.memory_space<vmem>>, vector<128x4xf32>
    %c0_6 = arith.constant 0 : index
    %c0_7 = arith.constant 0 : index
    %c0_8 = arith.constant 0 : index
    %5 = vector.load %arg4[%c0_6, %c0_7, %c0_8] : memref<2x4x32xf32, #tpu.memory_space<vmem>>, vector<1x4x32xf32>
    %6 = vector.shape_cast %5 : vector<1x4x32xf32> to vector<4x32xf32>
    %cst_9 = arith.constant dense<0.000000e+00> : vector<128x32xf32>
    %7 = tpu.matmul %4, %6, %cst_9 {dimension_numbers = #tpu.dot_dimension_numbers<[1], [0], [0], [1], [0, 0, 1, 1], [], []>} : vector<128x4xf32>, vector<4x32xf32>, vector<128x32xf32> -> vector<128x32xf32>
    %8 = arith.addf %3, %7 : vector<128x32xf32>
    %c0_10 = arith.constant 0 : index
    %c0_11 = arith.constant 0 : index
    %c0_12 = arith.constant 0 : index
    %9 = vector.load %arg5[%c0_10, %c0_11, %c0_12] : memref<2x1x32xf32, #tpu.memory_space<vmem>>, vector<1x1x32xf32>
    %10 = vector.shape_cast %9 : vector<1x1x32xf32> to vector<1x32xf32>
    %11 = vector.broadcast %10 : vector<1x32xf32> to vector<128x32xf32>
    %12 = arith.addf %8, %11 : vector<128x32xf32>
    %cst_13 = arith.constant 0.000000e+00 : f32
    %13 = vector.broadcast %cst_13 : f32 to vector<128x32xf32>
    %14 = arith.maximumf %12, %13 : vector<128x32xf32>
    %c0_14 = arith.constant 0 : index
    %c0_15 = arith.constant 0 : index
    %c0_16 = arith.constant 0 : index
    %15 = vector.load %arg6[%c0_14, %c0_15, %c0_16] : memref<2x32x32xf32, #tpu.memory_space<vmem>>, vector<1x32x32xf32>
    %16 = vector.shape_cast %15 : vector<1x32x32xf32> to vector<32x32xf32>
    %cst_17 = arith.constant dense<0.000000e+00> : vector<128x32xf32>
    %17 = tpu.matmul %14, %16, %cst_17 {dimension_numbers = #tpu.dot_dimension_numbers<[1], [0], [0], [1], [0, 0, 1, 1], [], []>} : vector<128x32xf32>, vector<32x32xf32>, vector<128x32xf32> -> vector<128x32xf32>
    %c0_18 = arith.constant 0 : index
    %c0_19 = arith.constant 0 : index
    %c0_20 = arith.constant 0 : index
    %18 = vector.load %arg7[%c0_18, %c0_19, %c0_20] : memref<2x1x32xf32, #tpu.memory_space<vmem>>, vector<1x1x32xf32>
    %19 = vector.shape_cast %18 : vector<1x1x32xf32> to vector<1x32xf32>
    %20 = vector.broadcast %19 : vector<1x32xf32> to vector<128x32xf32>
    %21 = arith.addf %17, %20 : vector<128x32xf32>
    %cst_21 = arith.constant 0.000000e+00 : f32
    %22 = vector.broadcast %cst_21 : f32 to vector<128x32xf32>
    %23 = arith.maximumf %21, %22 : vector<128x32xf32>
    %c0_22 = arith.constant 0 : index
    %c0_23 = arith.constant 0 : index
    %c0_24 = arith.constant 0 : index
    %24 = vector.load %arg8[%c0_22, %c0_23, %c0_24] : memref<2x32x1xf32, #tpu.memory_space<vmem>>, vector<1x32x1xf32>
    %25 = vector.shape_cast %24 : vector<1x32x1xf32> to vector<32x1xf32>
    %cst_25 = arith.constant dense<0.000000e+00> : vector<128x1xf32>
    %26 = tpu.matmul %23, %25, %cst_25 {dimension_numbers = #tpu.dot_dimension_numbers<[1], [0], [0], [1], [0, 0, 1, 1], [], []>} : vector<128x32xf32>, vector<32x1xf32>, vector<128x1xf32> -> vector<128x1xf32>
    %c0_26 = arith.constant 0 : index
    %c0_27 = arith.constant 0 : index
    %c0_28 = arith.constant 0 : index
    %27 = vector.load %arg9[%c0_26, %c0_27, %c0_28] : memref<2x1x1xf32, #tpu.memory_space<vmem>>, vector<1x1x1xf32>
    %28 = vector.shape_cast %27 : vector<1x1x1xf32> to vector<1x1xf32>
    %29 = vector.broadcast %28 : vector<1x1xf32> to vector<128x1xf32>
    %30 = arith.addf %26, %29 : vector<128x1xf32>
    %c0_29 = arith.constant 0 : index
    %c0_30 = arith.constant 0 : index
    %31 = vector.load %arg1[%c0_29, %c0_30] : memref<128x12xf32, #tpu.memory_space<vmem>>, vector<128x12xf32>
    %c1 = arith.constant 1 : index
    %c0_31 = arith.constant 0 : index
    %c0_32 = arith.constant 0 : index
    %32 = vector.load %arg3[%c1, %c0_31, %c0_32] : memref<2x12x32xf32, #tpu.memory_space<vmem>>, vector<1x12x32xf32>
    %33 = vector.shape_cast %32 : vector<1x12x32xf32> to vector<12x32xf32>
    %cst_33 = arith.constant dense<0.000000e+00> : vector<128x32xf32>
    %34 = tpu.matmul %31, %33, %cst_33 {dimension_numbers = #tpu.dot_dimension_numbers<[1], [0], [0], [1], [0, 0, 1, 1], [], []>} : vector<128x12xf32>, vector<12x32xf32>, vector<128x32xf32> -> vector<128x32xf32>
    %c0_34 = arith.constant 0 : index
    %c0_35 = arith.constant 0 : index
    %35 = vector.load %arg2[%c0_34, %c0_35] : memref<128x4xf32, #tpu.memory_space<vmem>>, vector<128x4xf32>
    %c1_36 = arith.constant 1 : index
    %c0_37 = arith.constant 0 : index
    %c0_38 = arith.constant 0 : index
    %36 = vector.load %arg4[%c1_36, %c0_37, %c0_38] : memref<2x4x32xf32, #tpu.memory_space<vmem>>, vector<1x4x32xf32>
    %37 = vector.shape_cast %36 : vector<1x4x32xf32> to vector<4x32xf32>
    %cst_39 = arith.constant dense<0.000000e+00> : vector<128x32xf32>
    %38 = tpu.matmul %35, %37, %cst_39 {dimension_numbers = #tpu.dot_dimension_numbers<[1], [0], [0], [1], [0, 0, 1, 1], [], []>} : vector<128x4xf32>, vector<4x32xf32>, vector<128x32xf32> -> vector<128x32xf32>
    %39 = arith.addf %34, %38 : vector<128x32xf32>
    %c1_40 = arith.constant 1 : index
    %c0_41 = arith.constant 0 : index
    %c0_42 = arith.constant 0 : index
    %40 = vector.load %arg5[%c1_40, %c0_41, %c0_42] : memref<2x1x32xf32, #tpu.memory_space<vmem>>, vector<1x1x32xf32>
    %41 = vector.shape_cast %40 : vector<1x1x32xf32> to vector<1x32xf32>
    %42 = vector.broadcast %41 : vector<1x32xf32> to vector<128x32xf32>
    %43 = arith.addf %39, %42 : vector<128x32xf32>
    %cst_43 = arith.constant 0.000000e+00 : f32
    %44 = vector.broadcast %cst_43 : f32 to vector<128x32xf32>
    %45 = arith.maximumf %43, %44 : vector<128x32xf32>
    %c1_44 = arith.constant 1 : index
    %c0_45 = arith.constant 0 : index
    %c0_46 = arith.constant 0 : index
    %46 = vector.load %arg6[%c1_44, %c0_45, %c0_46] : memref<2x32x32xf32, #tpu.memory_space<vmem>>, vector<1x32x32xf32>
    %47 = vector.shape_cast %46 : vector<1x32x32xf32> to vector<32x32xf32>
    %cst_47 = arith.constant dense<0.000000e+00> : vector<128x32xf32>
    %48 = tpu.matmul %45, %47, %cst_47 {dimension_numbers = #tpu.dot_dimension_numbers<[1], [0], [0], [1], [0, 0, 1, 1], [], []>} : vector<128x32xf32>, vector<32x32xf32>, vector<128x32xf32> -> vector<128x32xf32>
    %c1_48 = arith.constant 1 : index
    %c0_49 = arith.constant 0 : index
    %c0_50 = arith.constant 0 : index
    %49 = vector.load %arg7[%c1_48, %c0_49, %c0_50] : memref<2x1x32xf32, #tpu.memory_space<vmem>>, vector<1x1x32xf32>
    %50 = vector.shape_cast %49 : vector<1x1x32xf32> to vector<1x32xf32>
    %51 = vector.broadcast %50 : vector<1x32xf32> to vector<128x32xf32>
    %52 = arith.addf %48, %51 : vector<128x32xf32>
    %cst_51 = arith.constant 0.000000e+00 : f32
    %53 = vector.broadcast %cst_51 : f32 to vector<128x32xf32>
    %54 = arith.maximumf %52, %53 : vector<128x32xf32>
    %c1_52 = arith.constant 1 : index
    %c0_53 = arith.constant 0 : index
    %c0_54 = arith.constant 0 : index
    %55 = vector.load %arg8[%c1_52, %c0_53, %c0_54] : memref<2x32x1xf32, #tpu.memory_space<vmem>>, vector<1x32x1xf32>
    %56 = vector.shape_cast %55 : vector<1x32x1xf32> to vector<32x1xf32>
    %cst_55 = arith.constant dense<0.000000e+00> : vector<128x1xf32>
    %57 = tpu.matmul %54, %56, %cst_55 {dimension_numbers = #tpu.dot_dimension_numbers<[1], [0], [0], [1], [0, 0, 1, 1], [], []>} : vector<128x32xf32>, vector<32x1xf32>, vector<128x1xf32> -> vector<128x1xf32>
    %c1_56 = arith.constant 1 : index
    %c0_57 = arith.constant 0 : index
    %c0_58 = arith.constant 0 : index
    %58 = vector.load %arg9[%c1_56, %c0_57, %c0_58] : memref<2x1x1xf32, #tpu.memory_space<vmem>>, vector<1x1x1xf32>
    %59 = vector.shape_cast %58 : vector<1x1x1xf32> to vector<1x1xf32>
    %60 = vector.broadcast %59 : vector<1x1xf32> to vector<128x1xf32>
    %61 = arith.addf %57, %60 : vector<128x1xf32>
    %62 = tpu.iota {dimensions = array<i32: 1>} : vector<1x128xi32>
    %c0_i32 = arith.constant 0 : i32
    %63 = vector.broadcast %c0_i32 : i32 to vector<1x128xi32>
    %64 = arith.cmpi eq, %62, %63 : vector<1x128xi32>
    %cst_59 = arith.constant 0.000000e+00 : f32
    %65 = vector.shape_cast %64 : vector<1x128xi1> to vector<1x128xi1>
    %66 = vector.broadcast %65 : vector<1x128xi1> to vector<128x128xi1>
    %67 = vector.shape_cast %30 : vector<128x1xf32> to vector<128x1xf32>
    %68 = vector.broadcast %67 : vector<128x1xf32> to vector<128x128xf32>
    %69 = vector.broadcast %cst_59 : f32 to vector<128x128xf32>
    %70 = arith.select %66, %68, %69 : vector<128x128xi1>, vector<128x128xf32>
    %c1_i32 = arith.constant 1 : i32
    %71 = vector.broadcast %c1_i32 : i32 to vector<1x128xi32>
    %72 = arith.cmpi eq, %62, %71 : vector<1x128xi32>
    %cst_60 = arith.constant 0.000000e+00 : f32
    %73 = vector.shape_cast %72 : vector<1x128xi1> to vector<1x128xi1>
    %74 = vector.broadcast %73 : vector<1x128xi1> to vector<128x128xi1>
    %75 = vector.shape_cast %61 : vector<128x1xf32> to vector<128x1xf32>
    %76 = vector.broadcast %75 : vector<128x1xf32> to vector<128x128xf32>
    %77 = vector.broadcast %cst_60 : f32 to vector<128x128xf32>
    %78 = arith.select %74, %76, %77 : vector<128x128xi1>, vector<128x128xf32>
    %79 = arith.addf %70, %78 : vector<128x128xf32>
    %80 = tpu.transpose %79, [1, 0] : vector<128x128xf32> -> vector<128x128xf32>
    %81 = vector.extract_strided_slice %80 {offsets = [0, 0], sizes = [2, 128], strides = [1, 1]} : vector<128x128xf32> to vector<2x128xf32>
    %c0_61 = arith.constant 0 : index
    %c0_62 = arith.constant 0 : index
    %82 = vector.load %arg10[%c0_61, %c0_62] : memref<2x128xf32, #tpu.memory_space<vmem>>, vector<2x128xf32>
    tpu.vector_store %arg10[%c0_61, %c0_62], %81 {strides = array<i32>} : memref<2x128xf32, #tpu.memory_space<vmem>>, vector<2x128xf32>,
    return
  }
  func.func @transform_0(%arg0: i32) -> (i32, i32) {
    %c0_i32 = arith.constant 0 : i32
    %c0_i32_0 = arith.constant 0 : i32
    return %arg0, %c0_i32 : i32, i32
  }
  func.func @transform_1(%arg0: i32) -> (i32, i32) {
    %c0_i32 = arith.constant 0 : i32
    %c0_i32_0 = arith.constant 0 : i32
    return %arg0, %c0_i32 : i32, i32
  }
  func.func @transform_2(%arg0: i32) -> (i32, i32, i32) {
    %c0_i32 = arith.constant 0 : i32
    %c0_i32_0 = arith.constant 0 : i32
    %c0_i32_1 = arith.constant 0 : i32
    %c0_i32_2 = arith.constant 0 : i32
    return %c0_i32, %c0_i32_0, %c0_i32_1 : i32, i32, i32
  }
  func.func @transform_3(%arg0: i32) -> (i32, i32, i32) {
    %c0_i32 = arith.constant 0 : i32
    %c0_i32_0 = arith.constant 0 : i32
    %c0_i32_1 = arith.constant 0 : i32
    %c0_i32_2 = arith.constant 0 : i32
    return %c0_i32, %c0_i32_0, %c0_i32_1 : i32, i32, i32
  }
  func.func @transform_4(%arg0: i32) -> (i32, i32, i32) {
    %c0_i32 = arith.constant 0 : i32
    %c0_i32_0 = arith.constant 0 : i32
    %c0_i32_1 = arith.constant 0 : i32
    %c0_i32_2 = arith.constant 0 : i32
    return %c0_i32, %c0_i32_0, %c0_i32_1 : i32, i32, i32
  }
  func.func @transform_5(%arg0: i32) -> (i32, i32, i32) {
    %c0_i32 = arith.constant 0 : i32
    %c0_i32_0 = arith.constant 0 : i32
    %c0_i32_1 = arith.constant 0 : i32
    %c0_i32_2 = arith.constant 0 : i32
    return %c0_i32, %c0_i32_0, %c0_i32_1 : i32, i32, i32
  }
  func.func @transform_6(%arg0: i32) -> (i32, i32, i32) {
    %c0_i32 = arith.constant 0 : i32
    %c0_i32_0 = arith.constant 0 : i32
    %c0_i32_1 = arith.constant 0 : i32
    %c0_i32_2 = arith.constant 0 : i32
    return %c0_i32, %c0_i32_0, %c0_i32_1 : i32, i32, i32
  }
  func.func @transform_7(%arg0: i32) -> (i32, i32, i32) {
    %c0_i32 = arith.constant 0 : i32
    %c0_i32_0 = arith.constant 0 : i32
    %c0_i32_1 = arith.constant 0 : i32
    %c0_i32_2 = arith.constant 0 : i32
    return %c0_i32, %c0_i32_0, %c0_i32_1 : i32, i32, i32
  }
  func.func @transform_8(%arg0: i32) -> (i32, i32, i32) {
    %c0_i32 = arith.constant 0 : i32
    %c0_i32_0 = arith.constant 0 : i32
    %c0_i32_1 = arith.constant 0 : i32
    %c0_i32_2 = arith.constant 0 : i32
    return %c0_i32, %c0_i32_0, %c0_i32_1 : i32, i32, i32
  }
  func.func @transform_9(%arg0: i32) -> (i32, i32) {
    %c0_i32 = arith.constant 0 : i32
    %c0_i32_0 = arith.constant 0 : i32
    return %c0_i32, %arg0 : i32, i32
  }
}

</mosaic_0001>

<bundles_post_ra>
// kernel: tpu_custom_call.1
= control target key start
LH: loop header
LB: loop body
LE: loop exit
PB: predicated region body
PF: predicated region fallthrough
CT: control target
= control target key end

     0   :  { %14 = vsyncpa [#allocation3], 0  ;;  %s3739_s0 = inlined_call_operand.vmem [shape: f32[256,12], index: 0, kind: input, shape index: {}]   ;;  %s3740_s1 = inlined_call_operand.vmem [shape: f32[256,4], index: 1, kind: input, shape index: {}]   ;;  %s3741_s2 = inlined_call_operand.vmem [shape: f32[2,12,32], index: 2, kind: input, shape index: {}]   ;;  %s3742_s3 = inlined_call_operand.vmem [shape: f32[2,4,32], index: 3, kind: input, shape index: {}]   ;;  %s3743_s4 = inlined_call_operand.vmem [shape: f32[2,1,32], index: 4, kind: input, shape index: {}]   ;;  %s3744_s5 = inlined_call_operand.vmem [shape: f32[2,32,32], index: 5, kind: input, shape index: {}]   ;;  %s3745_s6 = inlined_call_operand.vmem [shape: f32[2,1,32], index: 6, kind: input, shape index: {}]   ;;  %s3746_s7 = inlined_call_operand.vmem [shape: f32[2,32,1], index: 7, kind: input, shape index: {}]   ;;  %s3747_s8 = inlined_call_operand.vmem [shape: f32[2,1,1], index: 8, kind: input, shape index: {}]   ;;  %s3748_s9 = inlined_call_operand.hbm [shape: f32[2,256], index: 9, kind: output, shape index: {}]  }
   0x1   :  { %16 = vsyncpa [#allocation3 + $0x1], 0  ;;  %s3139_s30 = smov 0   ;;  %s3141_s10 = smov 0  }
   0x2   :  { %s3143_s11 = smov 0   ;;  %s3145_s12 = smov 0  }
   0x3 LB: > { %s3160_s13 = sadd.s32 4294967295, %s3084_s12   ;;  %s2352_s14 = sadd.s32 4294967294, %s3084_s12   ;;  %s3084_s12 = sphi %s3145_s12, %s3756_s12   ;;  %s3080_s11 = sphi %s3143_s11, %s3755_s11   ;;  %s3076_s10 = sphi %s3141_s10, %s3754_s10   ;;  %s3072_s30 = sphi %s3139_s30, %s3753_s30  }
   0x4   : > { %s3164_s15 = sadd.s32 1, %s3084_s12   ;;  %s228_s16 = sadd.s32 1, %s3080_s11 }
   0x5   : > { %s225_s17 = ssub.s32 %s3084_s12, %s3164_s15  ;;  %p238_p0 = scmp.ne.s32.totalorder %s3080_s11, %s3076_s10 }
   0x6   : > { %p226_p1 = scmp.eq.s32.totalorder %s225_s17, 0  ;;  %p239_p2 = scmp.eq.s32.totalorder %s3160_s13, 1 }
   0x7   : > { %p244_p3 = scmp.ne.s32.totalorder %s3076_s10, %s3072_s30  ;;  %p245_p4 = scmp.eq.s32.totalorder %s2352_s14, 1 }
   0x8   : > { %s3175_s18 = scalar_select %p226_p1, %s3080_s11, %s228_s16  }
   0x9   : > { %p3177_p5 = por %p239_p2, %p238_p0  ;;  %p3181_p6 = por %p245_p4, %p244_p3 }
   0xa   : > { %p2355_p7 = scmp.ge.s32.totalorder %s3084_s12, 1  ;;  %p302_p8 = scmp.lt.s32.totalorder %s3084_s12, 3 }
   0xc   : > { %p303_p9 = pnand %p2355_p7, %p302_p8 }
   0xd   : > { %v389_v0 = vld [vmem:[%s3742_s3] sm:$0xf] (!%p303_p9)  ;;  %vm439_vm0 = vcmask (!%p303_p9), 1043456   ;;  %s2357_s23 = sshll.u32 (!%p303_p9), %s3160_s13, 4  ;;  %v372_v2 = vld [vmem:[%s3741_s2 + $0x8] sm:$0xf] (!%p303_p9) }
   0xe   : > { %306 = sbr.rel (%p303_p9) target bundleno = 1233 (0x4d1), region = 56  ;;  %v371_v1 = vld [vmem:[%s3741_s2] sm:$0xff] (!%p303_p9)  ;;  %2667 = vmatprep.subr.msk.mxu0 (!%p303_p9), %vm439_vm0, %v389_v0  ;;  %p344_p10 = scmp.lt.s32.totalorder (!%p303_p9), %s2357_s23, 31  ;;  %vm3086_vm1 = vmmov (!%p303_p9), 1   ;;  %v825_v6 = vld [vmem:[%s3744_s5 + $0x8] sm:$0xff] (!%p303_p9)  ;;  %vm390_vm3 = vcmask (!%p303_p9), 31744  }
   0xf   : > { %v824_v3 = vld [vmem:[%s3744_s5] sm:$0xff] (!%p303_p9)  ;;  %2668 = vmatpush3.msk.msra.mxu0 (!%p303_p9), %vm439_vm0, %v389_v0  ;;  %v2903_v4 = vpack.c.bf16 (!%p303_p9), %v372_v2, %v371_v1  ;;  %vm3203_vm2 = vmpackc.low (!%p303_p9), %vm439_vm0, %vm3086_vm1  ;;  %vm588_vm4 = vcmask (!%p303_p9), 97280   ;;  %v2430_v41 = vld [vmem:[%s3741_s2 + $0x10] sm:$0xff] (!%p303_p9)  ;;  %vm835_vm5 = vcmask (!%p303_p9), 261120   ;;  %s340_s26 = sand.u32 (!%p303_p9), 1, %s3076_s10  }
  0x10   : > { %v2909_v7 = vpack.c.bf16 (!%p303_p9), %v825_v6, %v824_v3  ;;  %v2432_v11 = vld [vmem:[%s3742_s3 + $0x4] sm:$0xf] (!%p303_p9)  ;;  %v2431_v42 = vld [vmem:[%s3741_s2 + $0x18] sm:$0xf] (!%p303_p9)  ;;  %v826_v44 = vld [vmem:[%s3744_s5 + $0x10] sm:$0xff] (!%p303_p9)  ;;  %s2356_s27 = sshll.u32 (!%p303_p9), %s340_s26, 1 }
  0x11   : > { %2905 = vmatprep.subr.msk.bf16.mxu0 (!%p303_p9), %vm3203_vm2, %v2903_v4  ;;  %v2925_v43 = vpack.c.bf16 (!%p303_p9), %v2431_v42, %v2430_v41  ;;  %v827_v45 = vld [vmem:[%s3744_s5 + $0x18] sm:$0xff] (!%p303_p9)  ;;  %v1045_v47 = vld [vmem:[%s3746_s7] sm:$0xff] (!%p303_p9)  ;;  %v1046_v48 = vld [vmem:[%s3746_s7 + $0x8] sm:$0xff] (!%p303_p9)  ;;  %s342_s28 = scalar_lea.vmem (!%p303_p9), [#allocation2], %s2356_s27  ;;  %s2268_s21 = scalar_lea.sflag (!%p303_p9), [#allocation3], %s340_s26 }
  0x12   : > { %2910 = vmatprep.subr.bf16.mxu1 (!%p303_p9), %v2909_v7  ;;  %v2913_v46 = vpack.c.bf16 (!%p303_p9), %v827_v45, %v826_v44  ;;  %v2917_v49 = vpack.c.bf16 (!%p303_p9), %v1046_v48, %v1045_v47  ;;  %v3377_v50 = vld [vmem:[%s3743_s4] ss:$0 sm:$0xff] (!%p303_p9)  ;;  %v1047_v55 = vld [vmem:[%s3746_s7 + $0x10] sm:$0xff] (!%p303_p9)  ;;  %v1048_v56 = vld [vmem:[%s3746_s7 + $0x18] sm:$0xff] (!%p303_p9) }
  0x13   : > { %2912 = vmatpush3.bf16.msra.mxu1 (!%p303_p9), %v2909_v7  ;;  %v2921_v62 = vpack.c.bf16 (!%p303_p9), %v1048_v56, %v1047_v55  ;;  %v2470_v44 = vld [vmem:[%s3744_s5 + $0x28] sm:$0xff] (!%p303_p9) }
  0x14   : > { %2914 = vmatprep.subr.bf16.mxu1 (!%p303_p9), %v2913_v46 }
  0x15   : > { %s3758_s23 = smov (!%p344_p10, %s2357_s23), 31 }
  0x16   : > { %s2358_s17 = sshll.u32 %s3758_s23, 3  ;;  %s2514_s23 = sshll.u32 %s3160_s13, 5 }
  0x17   : > { %s3220_s24 = scalar_lea.vmem %s3740_s1, %s2358_s17  ;;  %s3276_s29 = scalar_lea.vmem %s3739_s0, %s2358_s17  ;;  %2916 = vmatpush3.bf16.msra.mxu1 %v2913_v46 }
  0x18   : > { %v3223_v8 = vld [vmem:[%s3220_s24] sm:$0xff]  ;;  %v3226_v9 = vld [vmem:[%s3220_s24 + $0x8] sm:$0xff]  ;;  %v3229_v10 = vld [vmem:[%s3220_s24 + $0x10] sm:$0xff]  ;;  %2918 = vmatprep.subr.bf16.mxu1 %v2917_v49  ;;  %s3699_s17 = scalar_lea.hbm %s3748_s9, %s2514_s23 }
  0x19   : > { %2669 = vmatprep.mubr.msk.f32.mxu0 %vm390_vm3, %v3223_v8  ;;  %v3243_v12 = vld [vmem:[%s3220_s24 + $0x18] sm:$0xff]  ;;  %v3246_v13 = vld [vmem:[%s3220_s24 + $0x20] sm:$0xff]  ;;  %v378_v14 = vld [vmem:[%s3220_s24 + $0x28] sm:$0xff] }
  0x1a   : > { %2670 = vmatmul.mubr.msk.f32.vlgmr.msra.gmra.mrb[0].mxu0 %vm390_vm3, %v3226_v9  ;;  %v379_v15 = vld [vmem:[%s3220_s24 + $0x30] sm:$0xff]  ;;  %v380_v16 = vld [vmem:[%s3220_s24 + $0x38] sm:$0xff]  ;;  %v381_v17 = vld [vmem:[%s3220_s24 + $0x40] sm:$0xff] }
  0x1b   : > { %2908 = vmatpush3.bf16.msk.msra.mxu0 %vm3203_vm2, %v2903_v4  ;;  %2672 = vmatprep.mubr.msk.f32.mxu0 %vm390_vm3, %v3229_v10  ;;  %v382_v18 = vld [vmem:[%s3220_s24 + $0x48] sm:$0xff]  ;;  %v383_v19 = vld [vmem:[%s3220_s24 + $0x50] sm:$0xff]  ;;  %v384_v20 = vld [vmem:[%s3220_s24 + $0x58] sm:$0xff] }
  0x1c   : > { %2785 = vmatprep.subr.msk.mxu0 %vm439_vm0, %v2432_v11  ;;  %v385_v21 = vld [vmem:[%s3220_s24 + $0x60] sm:$0xff]  ;;  %v386_v22 = vld [vmem:[%s3220_s24 + $0x68] sm:$0xff]  ;;  %v387_v23 = vld [vmem:[%s3220_s24 + $0x70] sm:$0xff] }
  0x1d   : > { %v388_v24 = vld [vmem:[%s3220_s24 + $0x78] sm:$0xff]  ;;  %v355_v25 = vld [vmem:[%s3276_s29] sm:$0xff]  ;;  %v356_v26 = vld [vmem:[%s3276_s29 + $0x8] sm:$0xff]  ;;  %s3088_s24 = smov [#allocation2]  }
  0x1e   : > { %2673 = vmatmul.mubr.msk.f32.gmra.mrb[2].mxu0 %vm390_vm3, %v3243_v12  ;;  %v357_v27 = vld [vmem:[%s3276_s29 + $0x10] sm:$0xff]  ;;  %v358_v28 = vld [vmem:[%s3276_s29 + $0x18] sm:$0xff]  ;;  %v359_v29 = vld [vmem:[%s3276_s29 + $0x20] sm:$0xff]  ;;  %s3026_s13 = sshll.u32 %s3088_s24, 4  ;;  %s3027_s13 = int_to_ptr.vmem [resolvable:$false] %s3026_s13 }
  0x1f   : > { %2675 = vmatprep.mubr.msk.f32.mxu0 %vm390_vm3, %v3246_v13  ;;  %v360_v30 = vld [vmem:[%s3276_s29 + $0x28] sm:$0xff]  ;;  %v361_v31 = vld [vmem:[%s3276_s29 + $0x30] sm:$0xff]  ;;  %v362_v32 = vld [vmem:[%s3276_s29 + $0x38] sm:$0xff]  ;;  %s3028_s25 = scalar_lea.vmem %s3027_s13, 64 }
  0x20   : > { %v363_v33 = vld [vmem:[%s3276_s29 + $0x40] sm:$0xff]  ;;  %v364_v34 = vld [vmem:[%s3276_s29 + $0x48] sm:$0xff]  ;;  %v365_v35 = vld [vmem:[%s3276_s29 + $0x50] sm:$0xff] }
  0x21   : > { %v366_v36 = vld [vmem:[%s3276_s29 + $0x58] sm:$0xff]  ;;  %v367_v37 = vld [vmem:[%s3276_s29 + $0x60] sm:$0xff]  ;;  %v368_v38 = vld [vmem:[%s3276_s29 + $0x68] sm:$0xff] }
  0x22   : > { %2676 = vmatmul.mubr.msk.f32.gmra.mrb[4].mxu0 %vm390_vm3, %v378_v14  ;;  %v369_v39 = vld [vmem:[%s3276_s29 + $0x70] sm:$0xff]  ;;  %v370_v40 = vld [vmem:[%s3276_s29 + $0x78] sm:$0xff]  ;;  %s2281_s29 = sshll.u32 %s342_s28, 4  ;;  %s3694_s29 = int_to_ptr.vmem [resolvable:$true] %s2281_s29 }
  0x23   : > { %2678 = vmatprep.mubr.msk.f32.mxu0 %vm390_vm3, %v379_v15  ;;  %s3022_s22 = scalar_lea.vmem %s3694_s29, 32  ;;  %p3029_p0 = scmp.lt.s32.totalorder %s3694_s29, %s3027_s13 }
  0x24   : > { %p3023_p11 = scmp.ne.s32.totalorder %s3694_s29, %s3022_s22  ;;  %p3030_p1 = scmp.lt.s32.totalorder %s3028_s25, %s3022_s22 }
  0x26   : > { %2679 = vmatmul.mubr.msk.f32.gmra.mrb[6].mxu0 %vm390_vm3, %v380_v16  ;;  %p3024_p12 = pnand %p3023_p11, %p3177_p5  ;;  %p3031_p2 = por %p3030_p1, %p3029_p0 }
  0x27   : > { %2681 = vmatprep.mubr.msk.f32.mxu0 %vm390_vm3, %v381_v17 }
  0x28   : > { %p3025_p13 = pneg %p3024_p12 }
  0x2a   : > { %2682 = vmatmul.mubr.msk.f32.gmra.mrb[8].mxu0 %vm390_vm3, %v382_v18  ;;  %p3032_p3 = pnand %p3031_p2, %p3025_p13 }
  0x2b   : > { %2684 = vmatprep.mubr.msk.f32.mxu0 %vm390_vm3, %v383_v19 }
  0x2e   : > { %2685 = vmatmul.mubr.msk.f32.gmra.mrb[10].mxu0 %vm390_vm3, %v384_v20 }
  0x2f   : > { %2687 = vmatprep.mubr.msk.f32.mxu0 %vm390_vm3, %v385_v21 }
  0x32   : > { %2688 = vmatmul.mubr.msk.f32.gmra.mrb[12].mxu0 %vm390_vm3, %v386_v22 }
  0x33   : > { %2690 = vmatprep.mubr.msk.f32.mxu0 %vm390_vm3, %v387_v23 }
  0x36   : > { %2691 = vmatmul.mubr.msk.f32.gmra.mrb[14].mxu0 %vm390_vm3, %v388_v24 }
  0x37   : > { %2697 = vmatprep.mubr.msk.f32.mxu0 %vm588_vm4, %v355_v25 }
  0x3a   : > { %2698 = vmatmul.mubr.msk.f32.vlgmr.msra.gmra.mrb[0].mxu0 %vm588_vm4, %v356_v26 }
  0x3b   : > { %2700 = vmatprep.mubr.msk.f32.mxu0 %vm588_vm4, %v357_v27  ;;  %2786 = vmatpush3.msk.msra.mxu0 %vm439_vm0, %v2432_v11 }
  0x3c   : > { %2927 = vmatprep.subr.msk.bf16.mxu0 %vm3203_vm2, %v2925_v43 }
  0x3e   : > { %2701 = vmatmul.mubr.msk.f32.gmra.mrb[2].mxu0 %vm588_vm4, %v358_v28 }
  0x3f   : > { %2703 = vmatprep.mubr.msk.f32.mxu0 %vm588_vm4, %v359_v29 }
  0x42   : > { %2704 = vmatmul.mubr.msk.f32.gmra.mrb[4].mxu0 %vm588_vm4, %v360_v30 }
  0x43   : > { %2706 = vmatprep.mubr.msk.f32.mxu0 %vm588_vm4, %v361_v31 }
  0x46   : > { %2707 = vmatmul.mubr.msk.f32.gmra.mrb[6].mxu0 %vm588_vm4, %v362_v32 }
  0x47   : > { %2709 = vmatprep.mubr.msk.f32.mxu0 %vm588_vm4, %v363_v33 }
  0x4a   : > { %2710 = vmatmul.mubr.msk.f32.gmra.mrb[8].mxu0 %vm588_vm4, %v364_v34 }
  0x4b   : > { %2712 = vmatprep.mubr.msk.f32.mxu0 %vm588_vm4, %v365_v35 }
  0x4e   : > { %2713 = vmatmul.mubr.msk.f32.gmra.mrb[10].mxu0 %vm588_vm4, %v366_v36 }
  0x4f   : > { %2715 = vmatprep.mubr.msk.f32.mxu0 %vm588_vm4, %v367_v37 }
  0x52   : > { %2716 = vmatmul.mubr.msk.f32.gmra.mrb[12].mxu0 %vm588_vm4, %v368_v38 }
  0x53   : > { %2718 = vmatprep.mubr.msk.f32.mxu0 %vm588_vm4, %v369_v39 }
  0x56   : > { %2719 = vmatmul.mubr.msk.f32.gmra.mrb[14].mxu0 %vm588_vm4, %v370_v40 }
  0x57   : > { %2787 = vmatprep.mubr.msk.f32.mxu0 %vm390_vm3, %v3223_v8 }
  0x5a   : > { %2788 = vmatmul.mubr.msk.f32.vlgmr.msra.gmra.mrb[16].mxu0 %vm390_vm3, %v3226_v9 }
  0x5b   : > { %2790 = vmatprep.mubr.msk.f32.mxu0 %vm390_vm3, %v3229_v10  ;;  %2930 = vmatpush3.bf16.msk.msra.mxu0 %vm3203_vm2, %v2925_v43  ;;  %v2469_v43 = vld [vmem:[%s3744_s5 + $0x20] sm:$0xff] }
  0x5c   : > { %v2931_v46 = vpack.c.bf16 %v2470_v44, %v2469_v43 }
  0x5e   : > { %2791 = vmatmul.mubr.msk.f32.gmra.mrb[18].mxu0 %vm390_vm3, %v3243_v12 }
  0x5f   : > { %2793 = vmatprep.mubr.msk.f32.mxu0 %vm390_vm3, %v3246_v13 }
  0x62   : > { %2794 = vmatmul.mubr.msk.f32.gmra.mrb[20].mxu0 %vm390_vm3, %v378_v14 }
  0x63   : > { %2796 = vmatprep.mubr.msk.f32.mxu0 %vm390_vm3, %v379_v15 }
  0x66   : > { %2797 = vmatmul.mubr.msk.f32.gmra.mrb[22].mxu0 %vm390_vm3, %v380_v16 }
  0x67   : > { %2799 = vmatprep.mubr.msk.f32.mxu0 %vm390_vm3, %v381_v17 }
  0x6a   : > { %2800 = vmatmul.mubr.msk.f32.gmra.mrb[24].mxu0 %vm390_vm3, %v382_v18 }
  0x6b   : > { %2802 = vmatprep.mubr.msk.f32.mxu0 %vm390_vm3, %v383_v19 }
  0x6e   : > { %2803 = vmatmul.mubr.msk.f32.gmra.mrb[26].mxu0 %vm390_vm3, %v384_v20 }
  0x6f   : > { %2805 = vmatprep.mubr.msk.f32.mxu0 %vm390_vm3, %v385_v21 }
  0x72   : > { %2806 = vmatmul.mubr.msk.f32.gmra.mrb[28].mxu0 %vm390_vm3, %v386_v22 }
  0x73   : > { %2808 = vmatprep.mubr.msk.f32.mxu0 %vm390_vm3, %v387_v23 }
  0x76   : > { %2809 = vmatmul.mubr.msk.f32.gmra.mrb[30].mxu0 %vm390_vm3, %v388_v24 }
  0x77   : > { %2815 = vmatprep.mubr.msk.f32.mxu0 %vm588_vm4, %v355_v25 }
  0x7a   : > { %2816 = vmatmul.mubr.msk.f32.vlgmr.msra.gmra.mrb[16].mxu0 %vm588_vm4, %v356_v26 }
  0x7b   : > { %2818 = vmatprep.mubr.msk.f32.mxu0 %vm588_vm4, %v357_v27 }
  0x7e   : > { %2819 = vmatmul.mubr.msk.f32.gmra.mrb[18].mxu0 %vm588_vm4, %v358_v28 }
  0x7f   : > { %2821 = vmatprep.mubr.msk.f32.mxu0 %vm588_vm4, %v359_v29 }
  0x82   : > { %2822 = vmatmul.mubr.msk.f32.gmra.mrb[20].mxu0 %vm588_vm4, %v360_v30 }
  0x83   : > { %2824 = vmatprep.mubr.msk.f32.mxu0 %vm588_vm4, %v361_v31 }
  0x86   : > { %2825 = vmatmul.mubr.msk.f32.gmra.mrb[22].mxu0 %vm588_vm4, %v362_v32 }
  0x87   : > { %2827 = vmatprep.mubr.msk.f32.mxu0 %vm588_vm4, %v363_v33 }
  0x8a   : > { %2828 = vmatmul.mubr.msk.f32.gmra.mrb[24].mxu0 %vm588_vm4, %v364_v34 }
  0x8b   : > { %2830 = vmatprep.mubr.msk.f32.mxu0 %vm588_vm4, %v365_v35 }
  0x8e   : > { %2831 = vmatmul.mubr.msk.f32.gmra.mrb[26].mxu0 %vm588_vm4, %v366_v36 }
  0x8f   : > { %2833 = vmatprep.mubr.msk.f32.mxu0 %vm588_vm4, %v367_v37 }
  0x92   : > { %2834 = vmatmul.mubr.msk.f32.gmra.mrb[28].mxu0 %vm588_vm4, %v368_v38 }
  0x93   : > { %2836 = vmatprep.mubr.msk.f32.mxu0 %vm588_vm4, %v369_v39 }
  0x96   : > { %2837 = vmatmul.mubr.msk.f32.gmra.mrb[30].mxu0 %vm588_vm4, %v370_v40 }
 0x10d   : > { %v2699_v51 = vpop.f32.mrb[0].mxu0 }
 0x10e   : > { %v793_v52 = vadd.f32 %v2699_v51, %v3377_v50  ;;  %v706_v53 = vpop.f32.mrb[1].mxu0 }
 0x10f   : > { %v792_v54 = vadd.f32 %v3377_v50, %v706_v53 }
 0x110   : > { %v809_v59 = vmax.f32 %v793_v52, 0.0 }
 0x111   : > { %v808_v57 = vmax.f32 %v792_v54, 0.0  ;;  %v2702_v58 = vpop.f32.mrb[2].mxu0 }
 0x112   : > { %v795_v60 = vadd.f32 %v2702_v58, %v3377_v50  ;;  %v716_v61 = vpop.f32.mrb[3].mxu0 }
 0x113   : > { %v794_v63 = vadd.f32 %v3377_v50, %v716_v61  ;;  %2729 = vmatprep.mubr.msk.f32.mxu1 %vm835_vm5, %v808_v57  ;;  %v3458_v57 = vld [vmem:[%s3745_s6] ss:$0 sm:$0xff] }
 0x114   : > { %2730 = vmatmul.mubr.msk.f32.vlgmr.msra.gmra.mrb[0].mxu1 %vm835_vm5, %v809_v59  ;;  %v811_v2 = vmax.f32 %v795_v60, 0.0 }
 0x115   : > { %v810_v0 = vmax.f32 %v794_v63, 0.0  ;;  %v2705_v1 = vpop.f32.mrb[4].mxu0  ;;  %2920 = vmatpush3.bf16.msra.mxu1 %v2917_v49  ;;  %v2472_v63 = vld [vmem:[%s3744_s5 + $0x38] sm:$0xff] }
 0x116   : > { %v797_v3 = vadd.f32 %v2705_v1, %v3377_v50  ;;  %v726_v4 = vpop.f32.mrb[5].mxu0  ;;  %2922 = vmatprep.subr.bf16.mxu1 %v2921_v62 }
 0x117   : > { %v796_v5 = vadd.f32 %v3377_v50, %v726_v4  ;;  %2732 = vmatprep.mubr.msk.f32.mxu1 %vm835_vm5, %v810_v0 }
 0x118   : > { %2733 = vmatmul.mubr.msk.f32.gmra.mrb[2].mxu1 %vm835_vm5, %v811_v2  ;;  %v813_v8 = vmax.f32 %v797_v3, 0.0 }
 0x119   : > { %v812_v6 = vmax.f32 %v796_v5, 0.0  ;;  %v2708_v7 = vpop.f32.mrb[6].mxu0  ;;  %2924 = vmatpush3.bf16.msra.mxu1 %v2921_v62  ;;  %v2471_v62 = vld [vmem:[%s3744_s5 + $0x30] sm:$0xff] }
 0x11a   : > { %v799_v9 = vadd.f32 %v2708_v7, %v3377_v50  ;;  %v736_v10 = vpop.f32.mrb[7].mxu0  ;;  %2932 = vmatprep.subr.bf16.mxu1 %v2931_v46  ;;  %v2935_v5 = vpack.c.bf16 %v2472_v63, %v2471_v62 }
 0x11b   : > { %v798_v11 = vadd.f32 %v3377_v50, %v736_v10  ;;  %2735 = vmatprep.mubr.msk.f32.mxu1 %vm835_vm5, %v812_v6 }
 0x11c   : > { %2736 = vmatmul.mubr.msk.f32.gmra.mrb[4].mxu1 %vm835_vm5, %v813_v8  ;;  %v815_v14 = vmax.f32 %v799_v9, 0.0 }
 0x11d   : > { %v814_v12 = vmax.f32 %v798_v11, 0.0  ;;  %v2711_v13 = vpop.f32.mrb[8].mxu0 }
 0x11e   : > { %v801_v15 = vadd.f32 %v2711_v13, %v3377_v50  ;;  %v746_v16 = vpop.f32.mrb[9].mxu0 }
 0x11f   : > { %v800_v17 = vadd.f32 %v3377_v50, %v746_v16  ;;  %2738 = vmatprep.mubr.msk.f32.mxu1 %vm835_vm5, %v814_v12 }
 0x120   : > { %2739 = vmatmul.mubr.msk.f32.gmra.mrb[6].mxu1 %vm835_vm5, %v815_v14  ;;  %v817_v20 = vmax.f32 %v801_v15, 0.0 }
 0x121   : > { %v816_v18 = vmax.f32 %v800_v17, 0.0  ;;  %v2714_v19 = vpop.f32.mrb[10].mxu0 }
 0x122   : > { %v803_v21 = vadd.f32 %v2714_v19, %v3377_v50  ;;  %v756_v22 = vpop.f32.mrb[11].mxu0 }
 0x123   : > { %v802_v23 = vadd.f32 %v3377_v50, %v756_v22  ;;  %2741 = vmatprep.mubr.msk.f32.mxu1 %vm835_vm5, %v816_v18 }
 0x124   : > { %2742 = vmatmul.mubr.msk.f32.gmra.mrb[8].mxu1 %vm835_vm5, %v817_v20  ;;  %v819_v26 = vmax.f32 %v803_v21, 0.0 }
 0x125   : > { %v818_v24 = vmax.f32 %v802_v23, 0.0  ;;  %v2717_v25 = vpop.f32.mrb[12].mxu0 }
 0x126   : > { %v805_v27 = vadd.f32 %v2717_v25, %v3377_v50  ;;  %v766_v28 = vpop.f32.mrb[13].mxu0 }
 0x127   : > { %v804_v29 = vadd.f32 %v3377_v50, %v766_v28  ;;  %2744 = vmatprep.mubr.msk.f32.mxu1 %vm835_vm5, %v818_v24 }
 0x128   : > { %2745 = vmatmul.mubr.msk.f32.gmra.mrb[10].mxu1 %vm835_vm5, %v819_v26  ;;  %v821_v32 = vmax.f32 %v805_v27, 0.0 }
 0x129   : > { %v820_v30 = vmax.f32 %v804_v29, 0.0  ;;  %v2720_v31 = vpop.f32.mrb[14].mxu0 }
 0x12a   : > { %v807_v33 = vadd.f32 %v2720_v31, %v3377_v50  ;;  %v776_v34 = vpop.f32.mrb[15].mxu0 }
 0x12b   : > { %v806_v35 = vadd.f32 %v3377_v50, %v776_v34  ;;  %2747 = vmatprep.mubr.msk.f32.mxu1 %vm835_vm5, %v820_v30 }
 0x12c   : > { %2748 = vmatmul.mubr.msk.f32.gmra.mrb[12].mxu1 %vm835_vm5, %v821_v32  ;;  %v823_v37 = vmax.f32 %v807_v33, 0.0 }
 0x12d   : > { %v822_v36 = vmax.f32 %v806_v35, 0.0 }
 0x12f   : > { %2750 = vmatprep.mubr.msk.f32.mxu1 %vm835_vm5, %v822_v36 }
 0x130   : > { %2751 = vmatmul.mubr.msk.f32.gmra.mrb[14].mxu1 %vm835_vm5, %v823_v37  ;;  %v2468_v37 = vld [vmem:[%s3743_s4 + $0x1] ss:$0 sm:$0xff] }
 0x14d   : > { %v3417_v38 = vpop.f32.mrb[16].mxu0 }
 0x14e   : > { %v3419_v39 = vpop.f32.mrb[17].mxu0  ;;  %v1559_v63 = vadd.f32 %v3417_v38, %v2468_v37 }
 0x151   : > { %v3421_v40 = vpop.f32.mrb[18].mxu0 }
 0x152   : > { %v3423_v41 = vpop.f32.mrb[19].mxu0 }
 0x155   : > { %v3425_v42 = vpop.f32.mrb[20].mxu0 }
 0x156   : > { %v3433_v45 = vpop.f32.mrb[21].mxu0 }
 0x159   : > { %v3435_v47 = vpop.f32.mrb[22].mxu0 }
 0x15a   : > { %v3437_v48 = vpop.f32.mrb[23].mxu0 }
 0x15d   : > { %v3439_v49 = vpop.f32.mrb[24].mxu0 }
 0x15e   : > { %v3441_v50 = vpop.f32.mrb[25].mxu0 }
 0x161   : > { %v3443_v51 = vpop.f32.mrb[26].mxu0 }
 0x162   : > { %v3445_v52 = vpop.f32.mrb[27].mxu0 }
 0x165   : > { %v3447_v53 = vpop.f32.mrb[28].mxu0 }
 0x166   : > { %v3449_v54 = vpop.f32.mrb[29].mxu0 }
 0x169   : > { %v3451_v55 = vpop.f32.mrb[30].mxu0 }
 0x16a   : > { %v3453_v56 = vpop.f32.mrb[31].mxu0 }
 0x1e7   : > { %v2731_v58 = vpop.f32.mrb[0].mxu1 }
 0x1e8   : > { %v956_v59 = vadd.f32 %v2731_v58, %v3458_v57  ;;  %v950_v60 = vpop.f32.mrb[1].mxu1 }
 0x1e9   : > { %v951_v61 = vadd.f32 %v3458_v57, %v950_v60  ;;  %v1558_v60 = vadd.f32 %v2468_v37, %v3419_v39  ;;  %v1575_v39 = vmax.f32 %v1559_v63, 0.0 }
 0x1ea   : > { %v1030_v2 = vmax.f32 %v956_v59, 0.0 }
 0x1eb   : > { %v1029_v0 = vmax.f32 %v951_v61, 0.0  ;;  %v2734_v1 = vpop.f32.mrb[2].mxu1 }
 0x1ec   : > { %v966_v3 = vadd.f32 %v2734_v1, %v3458_v57  ;;  %v960_v4 = vpop.f32.mrb[3].mxu1  ;;  %v1574_v1 = vmax.f32 %v1558_v60, 0.0 }
 0x1ed   : > { %v961_v6 = vadd.f32 %v3458_v57, %v960_v4  ;;  %2761 = vmatprep.mubr.msk.f32.mxu1 %vm835_vm5, %v1029_v0  ;;  %v1562_v4 = vadd.f32 %v2468_v37, %v3433_v45  ;;  %v1566_v45 = vadd.f32 %v2468_v37, %v3441_v50  ;;  %v1570_v50 = vadd.f32 %v2468_v37, %v3449_v54 }
 0x1ee   : > { %2762 = vmatmul.mubr.msk.f32.vlgmr.msra.gmra.mrb[16].mxu1 %vm835_vm5, %v1030_v2  ;;  %v1032_v9 = vmax.f32 %v966_v3, 0.0  ;;  %v1560_v2 = vadd.f32 %v2468_v37, %v3423_v41 }
 0x1ef   : > { %v1031_v7 = vmax.f32 %v961_v6, 0.0  ;;  %2934 = vmatpush3.bf16.msra.mxu1 %v2931_v46  ;;  %v2737_v8 = vpop.f32.mrb[4].mxu1  ;;  %v1578_v41 = vmax.f32 %v1562_v4, 0.0  ;;  %v1564_v6 = vadd.f32 %v2468_v37, %v3437_v48  ;;  %v1568_v48 = vadd.f32 %v2468_v37, %v3445_v52 }
 0x1f0   : > { %v976_v10 = vadd.f32 %v2737_v8, %v3458_v57  ;;  %v970_v11 = vpop.f32.mrb[5].mxu1  ;;  %2936 = vmatprep.subr.bf16.mxu1 %v2935_v5  ;;  %v1576_v3 = vmax.f32 %v1560_v2, 0.0  ;;  %v1572_v52 = vadd.f32 %v2468_v37, %v3453_v56  ;;  %v2492_v56 = vld [vmem:[%s3746_s7 + $0x28] sm:$0xff] }
 0x1f1   : > { %v971_v12 = vadd.f32 %v3458_v57, %v970_v11  ;;  %2764 = vmatprep.mubr.msk.f32.mxu1 %vm835_vm5, %v1031_v7  ;;  %v1580_v8 = vmax.f32 %v1564_v6, 0.0 }
 0x1f2   : > { %2765 = vmatmul.mubr.msk.f32.gmra.mrb[18].mxu1 %vm835_vm5, %v1032_v9  ;;  %v1034_v15 = vmax.f32 %v976_v10, 0.0  ;;  %v1582_v10 = vmax.f32 %v1566_v45, 0.0 }
 0x1f3   : > { %v1033_v13 = vmax.f32 %v971_v12, 0.0  ;;  %v2740_v14 = vpop.f32.mrb[6].mxu1  ;;  %2938 = vmatpush3.bf16.msra.mxu1 %v2935_v5  ;;  %v1563_v5 = vadd.f32 %v3425_v42, %v2468_v37  ;;  %v1567_v42 = vadd.f32 %v3439_v49, %v2468_v37  ;;  %v1584_v12 = vmax.f32 %v1568_v48, 0.0 }
 0x1f4   : > { %v986_v16 = vadd.f32 %v2740_v14, %v3458_v57  ;;  %v980_v17 = vpop.f32.mrb[7].mxu1  ;;  %v1571_v49 = vadd.f32 %v3447_v53, %v2468_v37  ;;  %v1586_v14 = vmax.f32 %v1570_v50, 0.0  ;;  %v2491_v53 = vld [vmem:[%s3746_s7 + $0x20] sm:$0xff] }
 0x1f5   : > { %v981_v18 = vadd.f32 %v3458_v57, %v980_v17  ;;  %2767 = vmatprep.mubr.msk.f32.mxu1 %vm835_vm5, %v1033_v13  ;;  %v1579_v7 = vmax.f32 %v1563_v5, 0.0  ;;  %v1583_v11 = vmax.f32 %v1567_v42, 0.0  ;;  %v3087_v17 = vmov 0  }
 0x1f6   : > { %2768 = vmatmul.mubr.msk.f32.gmra.mrb[20].mxu1 %vm835_vm5, %v1034_v15  ;;  %v1036_v21 = vmax.f32 %v986_v16, 0.0  ;;  %v1587_v15 = vmax.f32 %v1571_v49, 0.0  ;;  %v1588_v16 = vmax.f32 %v1572_v52, 0.0  ;;  %3020 = vset.pattern.permute.xlu0 %v3087_v17 }
 0x1f7   : > { %v1035_v19 = vmax.f32 %v981_v18, 0.0  ;;  %v2743_v20 = vpop.f32.mrb[8].mxu1  ;;  %3021 = vset.pattern.permute.xlu1 %v3087_v17  ;;  %v2493_v18 = vld [vmem:[%s3746_s7 + $0x30] sm:$0xff] }
 0x1f8   : > { %v996_v22 = vadd.f32 %v2743_v20, %v3458_v57  ;;  %v990_v23 = vpop.f32.mrb[9].mxu1 }
 0x1f9   : > { %v991_v24 = vadd.f32 %v3458_v57, %v990_v23  ;;  %2770 = vmatprep.mubr.msk.f32.mxu1 %vm835_vm5, %v1035_v19  ;;  %v2494_v19 = vld [vmem:[%s3746_s7 + $0x38] sm:$0xff] }
 0x1fa   : > { %2771 = vmatmul.mubr.msk.f32.gmra.mrb[22].mxu1 %vm835_vm5, %v1036_v21  ;;  %v1038_v27 = vmax.f32 %v996_v22, 0.0  ;;  %v2943_v20 = vpack.c.bf16 %v2494_v19, %v2493_v18  ;;  %v3548_v21 = vld [vmem:[%s3747_s8] ss:$0 sm:$0xff] }
 0x1fb   : > { %v1037_v25 = vmax.f32 %v991_v24, 0.0  ;;  %v2746_v26 = vpop.f32.mrb[10].mxu1 }
 0x1fc   : > { %v1006_v28 = vadd.f32 %v2746_v26, %v3458_v57  ;;  %v1000_v29 = vpop.f32.mrb[11].mxu1 }
 0x1fd   : > { %v1001_v30 = vadd.f32 %v3458_v57, %v1000_v29  ;;  %2773 = vmatprep.mubr.msk.f32.mxu1 %vm835_vm5, %v1037_v25 }
 0x1fe   : > { %2774 = vmatmul.mubr.msk.f32.gmra.mrb[24].mxu1 %vm835_vm5, %v1038_v27  ;;  %v1040_v33 = vmax.f32 %v1006_v28, 0.0 }
 0x1ff   : > { %v1039_v31 = vmax.f32 %v1001_v30, 0.0  ;;  %v2749_v32 = vpop.f32.mrb[12].mxu1 }
 0x200   : > { %v1016_v34 = vadd.f32 %v2749_v32, %v3458_v57  ;;  %v1010_v35 = vpop.f32.mrb[13].mxu1 }
 0x201   : > { %v1011_v36 = vadd.f32 %v3458_v57, %v1010_v35  ;;  %2776 = vmatprep.mubr.msk.f32.mxu1 %vm835_vm5, %v1039_v31 }
 0x202   : > { %2777 = vmatmul.mubr.msk.f32.gmra.mrb[26].mxu1 %vm835_vm5, %v1040_v33  ;;  %v1042_v46 = vmax.f32 %v1016_v34, 0.0 }
 0x203   : > { %v1041_v43 = vmax.f32 %v1011_v36, 0.0  ;;  %v2752_v44 = vpop.f32.mrb[14].mxu1 }
 0x204   : > { %v1026_v58 = vadd.f32 %v2752_v44, %v3458_v57  ;;  %v1020_v59 = vpop.f32.mrb[15].mxu1 }
 0x205   : > { %v1021_v61 = vadd.f32 %v3458_v57, %v1020_v59  ;;  %2779 = vmatprep.mubr.msk.f32.mxu1 %vm835_vm5, %v1041_v43  ;;  %v1561_v57 = vadd.f32 %v3421_v40, %v2468_v37  ;;  %v1565_v40 = vadd.f32 %v3435_v47, %v2468_v37  ;;  %v1569_v47 = vadd.f32 %v3443_v51, %v2468_v37 }
 0x206   : > { %2780 = vmatmul.mubr.msk.f32.gmra.mrb[28].mxu1 %vm835_vm5, %v1042_v46  ;;  %v1044_v0 = vmax.f32 %v1026_v58, 0.0  ;;  %v1573_v51 = vadd.f32 %v3451_v55, %v2468_v37  ;;  %v2939_v55 = vpack.c.bf16 %v2492_v56, %v2491_v53 }
 0x207   : > { %v1043_v62 = vmax.f32 %v1021_v61, 0.0  ;;  %v1577_v38 = vmax.f32 %v1561_v57, 0.0  ;;  %v1581_v9 = vmax.f32 %v1565_v40, 0.0  ;;  %v1585_v13 = vmax.f32 %v1569_v47, 0.0  ;;  %v3566_v57 = vld [vmem:[%s3745_s6 + $0x1] ss:$0 sm:$0xff] }
 0x208   : > { %v1589_v54 = vmax.f32 %v1573_v51, 0.0  ;;  %2940 = vmatprep.subr.bf16.mxu1 %v2939_v55 }
 0x209   : > { %2782 = vmatprep.mubr.msk.f32.mxu1 %vm835_vm5, %v1043_v62 }
 0x20a   : > { %2783 = vmatmul.mubr.msk.f32.gmra.mrb[30].mxu1 %vm835_vm5, %v1044_v0 }
 0x20b   : > { %2847 = vmatprep.mubr.msk.f32.mxu1 %vm835_vm5, %v1574_v1 }
 0x20e   : > { %2848 = vmatmul.mubr.msk.f32.vlgmr.msra.gmra.mrb[32].mxu1 %vm835_vm5, %v1575_v39 }
 0x20f   : > { %2850 = vmatprep.mubr.msk.f32.mxu1 %vm835_vm5, %v1576_v3  ;;  %2942 = vmatpush3.bf16.msra.mxu1 %v2939_v55 }
 0x210   : > { %2944 = vmatprep.subr.bf16.mxu1 %v2943_v20 }
 0x212   : > { %2851 = vmatmul.mubr.msk.f32.gmra.mrb[34].mxu1 %vm835_vm5, %v1577_v38 }
 0x213   : > { %2853 = vmatprep.mubr.msk.f32.mxu1 %vm835_vm5, %v1578_v41  ;;  %2946 = vmatpush3.bf16.msra.mxu1 %v2943_v20 }
 0x216   : > { %2854 = vmatmul.mubr.msk.f32.gmra.mrb[36].mxu1 %vm835_vm5, %v1579_v7 }
 0x217   : > { %2856 = vmatprep.mubr.msk.f32.mxu1 %vm835_vm5, %v1580_v8 }
 0x21a   : > { %2857 = vmatmul.mubr.msk.f32.gmra.mrb[38].mxu1 %vm835_vm5, %v1581_v9 }
 0x21b   : > { %2859 = vmatprep.mubr.msk.f32.mxu1 %vm835_vm5, %v1582_v10 }
 0x21e   : > { %2860 = vmatmul.mubr.msk.f32.gmra.mrb[40].mxu1 %vm835_vm5, %v1583_v11 }
 0x21f   : > { %2862 = vmatprep.mubr.msk.f32.mxu1 %vm835_vm5, %v1584_v12 }
 0x222   : > { %2863 = vmatmul.mubr.msk.f32.gmra.mrb[42].mxu1 %vm835_vm5, %v1585_v13 }
 0x223   : > { %2865 = vmatprep.mubr.msk.f32.mxu1 %vm835_vm5, %v1586_v14 }
 0x226   : > { %2866 = vmatmul.mubr.msk.f32.gmra.mrb[44].mxu1 %vm835_vm5, %v1587_v15 }
 0x227   : > { %2868 = vmatprep.mubr.msk.f32.mxu1 %vm835_vm5, %v1588_v16 }
 0x22a   : > { %2869 = vmatmul.mubr.msk.f32.gmra.mrb[46].mxu1 %vm835_vm5, %v1589_v54 }
 0x2c1   : > { %v2763_v22 = vpop.f32.mrb[16].mxu1 }
 0x2c2   : > { %v1176_v23 = vadd.f32 %v2763_v22, %v3548_v21  ;;  %v1170_v24 = vpop.f32.mrb[17].mxu1 }
 0x2c3   : > { %v1171_v26 = vadd.f32 %v3548_v21, %v1170_v24 }
 0x2c4   : > { %2030 = vperm.xlu0 %3020, %v1176_v23  }
 0x2c5   : > { %v2766_v25 = vpop.f32.mrb[18].mxu1 }
 0x2c6   : > { %v1186_v27 = vadd.f32 %v2766_v25, %v3548_v21  ;;  %v1180_v28 = vpop.f32.mrb[19].mxu1 }
 0x2c7   : > { %v1181_v30 = vadd.f32 %v3548_v21, %v1180_v28 }
 0x2c8   : > { %2040 = vperm.xlu1 %3021, %v1186_v27   ;;  %2025 = vperm.xlu0 %3020, %v1171_v26  }
 0x2c9   : > { %v2769_v29 = vpop.f32.mrb[20].mxu1 }
 0x2ca   : > { %v1190_v31 = vpop.f32.mrb[21].mxu1  ;;  %v1196_v34 = vadd.f32 %v2769_v29, %v3548_v21 }
 0x2cb   : > { %v1191_v32 = vadd.f32 %v3548_v21, %v1190_v31 }
 0x2cc   : > { %2035 = vperm.xlu1 %3021, %v1181_v30  }
 0x2cd   : > { %v2772_v33 = vpop.f32.mrb[22].mxu1  ;;  %2045 = vperm.xlu0 %3020, %v1191_v32  }
 0x2ce   : > { %v1200_v35 = vpop.f32.mrb[23].mxu1  ;;  %v1206_v43 = vadd.f32 %v2772_v33, %v3548_v21 }
 0x2cf   : > { %v1201_v36 = vadd.f32 %v3548_v21, %v1200_v35 }
 0x2d0   : > { %2050 = vperm.xlu1 %3021, %v1196_v34  }
 0x2d1   : > { %v2775_v37 = vpop.f32.mrb[24].mxu1  ;;  %2055 = vperm.xlu0 %3020, %v1201_v36  }
 0x2d2   : > { %v1210_v44 = vpop.f32.mrb[25].mxu1  ;;  %v1216_v59 = vadd.f32 %v2775_v37, %v3548_v21 }
 0x2d3   : > { %v1211_v46 = vadd.f32 %v3548_v21, %v1210_v44  ;;  %v2496_v44 = vld [vmem:[%s3747_s8 + $0x1] ss:$0 sm:$0xff] }
 0x2d4   : > { %2060 = vperm.xlu1 %3021, %v1206_v43  }
 0x2d5   : > { %v2778_v58 = vpop.f32.mrb[26].mxu1  ;;  %2065 = vperm.xlu0 %3020, %v1211_v46  }
 0x2d6   : > { %v1226_v60 = vadd.f32 %v2778_v58, %v3548_v21  ;;  %v1220_v61 = vpop.f32.mrb[27].mxu1 }
 0x2d7   : > { %v1221_v0 = vadd.f32 %v3548_v21, %v1220_v61 }
 0x2d8   : > { %2070 = vperm.xlu1 %3021, %v1216_v59  }
 0x2d9   : > { %v2781_v62 = vpop.f32.mrb[28].mxu1  ;;  %2080 = vperm.xlu0 %3020, %v1226_v60  }
 0x2da   : > { %v1230_v63 = vpop.f32.mrb[29].mxu1  ;;  %v1236_v39 = vadd.f32 %v2781_v62, %v3548_v21 }
 0x2db   : > { %v1231_v5 = vadd.f32 %v3548_v21, %v1230_v63 }
 0x2dd   : > { %2075 = vperm.xlu0 %3020, %v1221_v0   ;;  %v2784_v1 = vpop.f32.mrb[30].mxu1 }
 0x2de   : > { %v1240_v2 = vpop.f32.mrb[31].mxu1  ;;  %v1246_v9 = vadd.f32 %v2784_v1, %v3548_v21 }
 0x2df   : > { %v1241_v50 = vadd.f32 %v3548_v21, %v1240_v2 }
 0x2e1   : > { %2090 = vperm.xlu0 %3020, %v1236_v39   ;;  %v2849_v3 = vpop.f32.mrb[32].mxu1 }
 0x2e2   : > { %v1723_v4 = vadd.f32 %v2849_v3, %v3566_v57  ;;  %v1717_v38 = vpop.f32.mrb[33].mxu1 }
 0x2e3   : > { %v1718_v41 = vadd.f32 %v3566_v57, %v1717_v38 }
 0x2e4   : > { %v1797_v40 = vmax.f32 %v1723_v4, 0.0 }
 0x2e5   : > { %v1796_v6 = vmax.f32 %v1718_v41, 0.0  ;;  %2085 = vperm.xlu0 %3020, %v1231_v5   ;;  %v2852_v7 = vpop.f32.mrb[34].mxu1 }
 0x2e6   : > { %v1733_v8 = vadd.f32 %v2852_v7, %v3566_v57  ;;  %v1727_v45 = vpop.f32.mrb[35].mxu1 }
 0x2e7   : > { %v1728_v42 = vadd.f32 %v3566_v57, %v1727_v45  ;;  %2879 = vmatprep.mubr.msk.f32.mxu1 %vm835_vm5, %v1796_v6 }
 0x2e8   : > { %2880 = vmatmul.mubr.msk.f32.vlgmr.msra.gmra.mrb[48].mxu1 %vm835_vm5, %v1797_v40  ;;  %v1799_v11 = vmax.f32 %v1733_v8, 0.0 }
 0x2e9   : > { %v1798_v10 = vmax.f32 %v1728_v42, 0.0  ;;  %2100 = vperm.xlu0 %3020, %v1246_v9   ;;  %v2855_v48 = vpop.f32.mrb[36].mxu1 }
 0x2ea   : > { %v1743_v47 = vadd.f32 %v2855_v48, %v3566_v57  ;;  %v1737_v12 = vpop.f32.mrb[37].mxu1 }
 0x2eb   : > { %v1738_v13 = vadd.f32 %v3566_v57, %v1737_v12  ;;  %2882 = vmatprep.mubr.msk.f32.mxu1 %vm835_vm5, %v1798_v10 }
 0x2ec   : > { %2883 = vmatmul.mubr.msk.f32.gmra.mrb[50].mxu1 %vm835_vm5, %v1799_v11  ;;  %v1801_v52 = vmax.f32 %v1743_v47, 0.0 }
 0x2ed   : > { %v1800_v49 = vmax.f32 %v1738_v13, 0.0  ;;  %v2858_v14 = vpop.f32.mrb[38].mxu1  ;;  %2095 = vperm.xlu0 %3020, %v1241_v50  }
 0x2ee   : > { %v1753_v15 = vadd.f32 %v2858_v14, %v3566_v57  ;;  %v1747_v51 = vpop.f32.mrb[39].mxu1 }
 0x2ef   : > { %v1748_v16 = vadd.f32 %v3566_v57, %v1747_v51  ;;  %2885 = vmatprep.mubr.msk.f32.mxu1 %vm835_vm5, %v1800_v49 }
 0x2f0   : > { %2886 = vmatmul.mubr.msk.f32.gmra.mrb[52].mxu1 %vm835_vm5, %v1801_v52  ;;  %v1803_v53 = vmax.f32 %v1753_v15, 0.0 }
 0x2f1   : > { %v1802_v54 = vmax.f32 %v1748_v16, 0.0  ;;  %v2861_v17 = vpop.f32.mrb[40].mxu1 }
 0x2f2   : > { %v1763_v56 = vadd.f32 %v2861_v17, %v3566_v57  ;;  %v1757_v55 = vpop.f32.mrb[41].mxu1 }
 0x2f3   : > { %v1758_v18 = vadd.f32 %v3566_v57, %v1757_v55  ;;  %2888 = vmatprep.mubr.msk.f32.mxu1 %vm835_vm5, %v1802_v54 }
 0x2f4   : > { %2889 = vmatmul.mubr.msk.f32.gmra.mrb[54].mxu1 %vm835_vm5, %v1803_v53  ;;  %v1805_v21 = vmax.f32 %v1763_v56, 0.0 }
 0x2f5   : > { %v1804_v19 = vmax.f32 %v1758_v18, 0.0  ;;  %v2864_v20 = vpop.f32.mrb[42].mxu1 }
 0x2f6   : > { %v1773_v22 = vadd.f32 %v2864_v20, %v3566_v57  ;;  %v1767_v23 = vpop.f32.mrb[43].mxu1 }
 0x2f7   : > { %v1768_v24 = vadd.f32 %v3566_v57, %v1767_v23  ;;  %2891 = vmatprep.mubr.msk.f32.mxu1 %vm835_vm5, %v1804_v19 }
 0x2f8   : > { %2892 = vmatmul.mubr.msk.f32.gmra.mrb[56].mxu1 %vm835_vm5, %v1805_v21  ;;  %v1807_v27 = vmax.f32 %v1773_v22, 0.0  ;;  %v2018_v22 = vlaneseq }
 0x2f9   : > { %v1806_v25 = vmax.f32 %v1768_v24, 0.0  ;;  %v2867_v26 = vpop.f32.mrb[44].mxu1 }
 0x2fa   : > { %v1783_v28 = vadd.f32 %v2867_v26, %v3566_v57  ;;  %v1777_v29 = vpop.f32.mrb[45].mxu1  ;;  %v3616_v24 = vand.u32 127, %v2018_v22 }
 0x2fb   : > { %v1778_v30 = vadd.f32 %v3566_v57, %v1777_v29  ;;  %2894 = vmatprep.mubr.msk.f32.mxu1 %vm835_vm5, %v1806_v25 }
 0x2fc   : > { %2895 = vmatmul.mubr.msk.f32.gmra.mrb[58].mxu1 %vm835_vm5, %v1807_v27  ;;  %v1809_v33 = vmax.f32 %v1783_v28, 0.0  ;;  %vm2119_vm6 = vcmp.eq.s32.totalorder %v3616_v24, 1  ;;  %vm2020_vm7 = vcmp.eq.s32.totalorder %v3616_v24, 0 }
 0x2fd   : > { %v1808_v31 = vmax.f32 %v1778_v30, 0.0  ;;  %v2870_v32 = vpop.f32.mrb[46].mxu1 }
 0x2fe   : > { %v1793_v34 = vadd.f32 %v2870_v32, %v3566_v57  ;;  %v1787_v35 = vpop.f32.mrb[47].mxu1 }
 0x2ff   : > { %v1788_v36 = vadd.f32 %v3566_v57, %v1787_v35  ;;  %2897 = vmatprep.mubr.msk.f32.mxu1 %vm835_vm5, %v1808_v31 }
 0x300   : > { %2898 = vmatmul.mubr.msk.f32.gmra.mrb[60].mxu1 %vm835_vm5, %v1809_v33  ;;  %v1811_v43 = vmax.f32 %v1793_v34, 0.0 }
 0x301   : > { %v1810_v37 = vmax.f32 %v1788_v36, 0.0 }
 0x303   : > { %2900 = vmatprep.mubr.msk.f32.mxu1 %vm835_vm5, %v1810_v37 }
 0x304   : > { %2901 = vmatmul.mubr.msk.f32.gmra.mrb[62].mxu1 %vm835_vm5, %v1811_v43 }
 0x343   : > { %v2031_v14 = vpop.permute.xlu0 %2030 }
 0x344   : > { %v2104_v34 = vsel %vm2020_vm7, %v2031_v14, 0.0 }
 0x347   : > { %v2026_v52 = vpop.permute.xlu0 %2025  ;;  %v2041_v17 = vpop.permute.xlu1 %2040 }
 0x348   : > { %v2103_v28 = vsel %vm2020_vm7, %v2026_v52, 0.0 }
 0x34b   : > { %v2036_v56 = vpop.permute.xlu1 %2035 }
 0x34c   : > { %v2046_v15 = vpop.permute.xlu0 %2045  ;;  %v2105_v43 = vsel %vm2020_vm7, %v2036_v56, 0.0 }
 0x34f   : > { %v2051_v18 = vpop.permute.xlu1 %2050 }
 0x350   : > { %v2056_v51 = vpop.permute.xlu0 %2055 }
 0x353   : > { %v2061_v20 = vpop.permute.xlu1 %2060 }
 0x354   : > { %v2066_v16 = vpop.permute.xlu0 %2065 }
 0x357   : > { %v2071_v23 = vpop.permute.xlu1 %2070 }
 0x358   : > { %v3606_v54 = vpop.permute.xlu0 %2080 }
 0x35c   : > { %v3608_v53 = vpop.permute.xlu0 %2075 }
 0x360   : > { %v3610_v55 = vpop.permute.xlu0 %2090 }
 0x364   : > { %v3612_v19 = vpop.permute.xlu0 %2085 }
 0x368   : > { %v3614_v21 = vpop.permute.xlu0 %2100 }
 0x36c   : > { %v3618_v25 = vpop.permute.xlu0 %2095 }
 0x3bb   : > { %v2881_v46 = vpop.f32.mrb[48].mxu1 }
 0x3bc   : > { %v1945_v58 = vadd.f32 %v2881_v46, %v2496_v44  ;;  %v1939_v59 = vpop.f32.mrb[49].mxu1 }
 0x3bd   : > { %v1940_v60 = vadd.f32 %v2496_v44, %v1939_v59  ;;  %v2106_v59 = vsel %vm2020_vm7, %v2041_v17, 0.0  ;;  %v2115_v17 = vsel %vm2020_vm7, %v3612_v19, 0.0  ;;  %v2117_v19 = vsel %vm2020_vm7, %v3618_v25, 0.0 }
 0x3be   : > { %2129 = vperm.xlu1 %3021, %v1945_v58  }
 0x3bf   : > { %v2884_v61 = vpop.f32.mrb[50].mxu1  ;;  %2124 = vperm.xlu0 %3020, %v1940_v60  }
 0x3c0   : > { %v1955_v62 = vadd.f32 %v2884_v61, %v2496_v44  ;;  %v1949_v63 = vpop.f32.mrb[51].mxu1 }
 0x3c1   : > { %v1950_v0 = vadd.f32 %v2496_v44, %v1949_v63  ;;  %v2107_v63 = vsel %vm2020_vm7, %v2046_v15, 0.0  ;;  %v2114_v15 = vsel %vm2020_vm7, %v3606_v54, 0.0  ;;  %v2116_v54 = vsel %vm2020_vm7, %v3610_v55, 0.0 }
 0x3c2   : > { %2139 = vperm.xlu1 %3021, %v1955_v62   ;;  %v2118_v55 = vsel %vm2020_vm7, %v3614_v21, 0.0 }
 0x3c3   : > { %v2887_v1 = vpop.f32.mrb[52].mxu1  ;;  %2134 = vperm.xlu0 %3020, %v1950_v0  }
 0x3c4   : > { %v1965_v2 = vadd.f32 %v2887_v1, %v2496_v44  ;;  %v1959_v39 = vpop.f32.mrb[53].mxu1 }
 0x3c5   : > { %v1960_v57 = vadd.f32 %v2496_v44, %v1959_v39 }
 0x3c6   : > { %2149 = vperm.xlu1 %3021, %v1965_v2  }
 0x3c7   : > { %v2890_v3 = vpop.f32.mrb[54].mxu1  ;;  %2144 = vperm.xlu0 %3020, %v1960_v57   ;;  %v2108_v57 = vsel %vm2020_vm7, %v2051_v18, 0.0 }
 0x3c8   : > { %v1975_v4 = vadd.f32 %v2890_v3, %v2496_v44  ;;  %v1969_v38 = vpop.f32.mrb[55].mxu1 }
 0x3c9   : > { %v1970_v5 = vadd.f32 %v2496_v44, %v1969_v38  ;;  %v2109_v38 = vsel %vm2020_vm7, %v2056_v51, 0.0 }
 0x3ca   : > { %2159 = vperm.xlu1 %3021, %v1975_v4  }
 0x3cb   : > { %v2893_v41 = vpop.f32.mrb[56].mxu1  ;;  %2154 = vperm.xlu0 %3020, %v1970_v5  }
 0x3cc   : > { %v1985_v6 = vadd.f32 %v2893_v41, %v2496_v44  ;;  %v1979_v7 = vpop.f32.mrb[57].mxu1 }
 0x3cd   : > { %v1980_v40 = vadd.f32 %v2496_v44, %v1979_v7 }
 0x3ce   : > { %2169 = vperm.xlu1 %3021, %v1985_v6  }
 0x3cf   : > { %v2896_v8 = vpop.f32.mrb[58].mxu1  ;;  %2164 = vperm.xlu0 %3020, %v1980_v40   ;;  %v2110_v40 = vsel %vm2020_vm7, %v2061_v20, 0.0 }
 0x3d0   : > { %v1995_v45 = vadd.f32 %v2896_v8, %v2496_v44  ;;  %v1989_v9 = vpop.f32.mrb[59].mxu1 }
 0x3d1   : > { %v1990_v10 = vadd.f32 %v2496_v44, %v1989_v9 }
 0x3d2   : > { %2179 = vperm.xlu1 %3021, %v1995_v45  }
 0x3d3   : > { %v2899_v42 = vpop.f32.mrb[60].mxu1 }
 0x3d4   : > { %v1999_v48 = vpop.f32.mrb[61].mxu1  ;;  %v2005_v47 = vadd.f32 %v2899_v42, %v2496_v44  ;;  %v2111_v42 = vsel %vm2020_vm7, %v2066_v16, 0.0 }
 0x3d5   : > { %v2000_v50 = vadd.f32 %v2496_v44, %v1999_v48 }
 0x3d6   : > { %2174 = vperm.xlu1 %3021, %v1990_v10  }
 0x3d7   : > { %v2902_v11 = vpop.f32.mrb[62].mxu1 }
 0x3d8   : > { %v2009_v12 = vpop.f32.mrb[63].mxu1  ;;  %v2015_v49 = vadd.f32 %v2902_v11, %v2496_v44  ;;  %v2112_v11 = vsel %vm2020_vm7, %v2071_v23, 0.0 }
 0x3d9   : > { %v2010_v13 = vadd.f32 %v2496_v44, %v2009_v12 }
 0x3da   : > { %2189 = vperm.xlu1 %3021, %v2005_v47  }
 0x3de   : > { %2184 = vperm.xlu1 %3021, %v2000_v50  }
 0x3e2   : > { %2194 = vperm.xlu1 %3021, %v2010_v13   ;;  %v2113_v13 = vsel %vm2020_vm7, %v3608_v53, 0.0 }
 0x3e6   : > { %2199 = vperm.xlu1 %3021, %v2015_v49  }
 0x43d   : > { %v2130_v26 = vpop.permute.xlu1 %2129 }
 0x43e   : > { %v2125_v27 = vpop.permute.xlu0 %2124  ;;  %v2203_v31 = vsel %vm2119_vm6, %v2130_v26, 0.0 }
 0x43f   : > { %v2202_v29 = vsel %vm2119_vm6, %v2125_v27, 0.0  ;;  %v2219_v35 = vadd.f32 %v2203_v31, %v2104_v34 }
 0x440   : > { %v2218_v30 = vadd.f32 %v2202_v29, %v2103_v28 }
 0x441   : > { %v2140_v32 = vpop.permute.xlu1 %2139 }
 0x442   : > { %2234 = vxpose.xlu0.b32.start [1/16] (narrow) %v2218_v30, 8  ;;  %v2135_v33 = vpop.permute.xlu0 %2134  ;;  %v2205_v46 = vsel %vm2119_vm6, %v2140_v32, 0.0 }
 0x443   : > { %v2204_v36 = vsel %vm2119_vm6, %v2135_v33, 0.0  ;;  %v2221_v60 = vadd.f32 %v2205_v46, %v2106_v59 }
 0x444   : > { %v2220_v44 = vadd.f32 %v2204_v36, %v2105_v43 }
 0x445   : > { %v2150_v37 = vpop.permute.xlu1 %2149 }
 0x446   : > { %2235 = vxpose.xlu0.b32.cont [2/16] (narrow) %v2219_v35, 8  ;;  %v2145_v58 = vpop.permute.xlu0 %2144  ;;  %v2207_v1 = vsel %vm2119_vm6, %v2150_v37, 0.0 }
 0x447   : > { %v2206_v62 = vsel %vm2119_vm6, %v2145_v58, 0.0  ;;  %v2223_v3 = vadd.f32 %v2207_v1, %v2108_v57 }
 0x448   : > { %v2222_v0 = vadd.f32 %v2206_v62, %v2107_v63 }
 0x449   : > { %v2160_v61 = vpop.permute.xlu1 %2159 }
 0x44a   : > { %2236 = vxpose.xlu0.b32.cont [3/16] (narrow) %v2220_v44, 8  ;;  %v2155_v2 = vpop.permute.xlu0 %2154  ;;  %v2209_v6 = vsel %vm2119_vm6, %v2160_v61, 0.0 }
 0x44b   : > { %v2208_v4 = vsel %vm2119_vm6, %v2155_v2, 0.0  ;;  %v2225_v8 = vadd.f32 %v2209_v6, %v2110_v40 }
 0x44c   : > { %v2224_v5 = vadd.f32 %v2208_v4, %v2109_v38 }
 0x44d   : > { %v2170_v39 = vpop.permute.xlu1 %2169 }
 0x44e   : > { %2237 = vxpose.xlu0.b32.cont [4/16] (narrow) %v2221_v60, 8  ;;  %v2165_v7 = vpop.permute.xlu0 %2164  ;;  %v2211_v48 = vsel %vm2119_vm6, %v2170_v39, 0.0 }
 0x44f   : > { %v2210_v45 = vsel %vm2119_vm6, %v2165_v7, 0.0  ;;  %v2227_v47 = vadd.f32 %v2211_v48, %v2112_v11 }
 0x450   : > { %v2226_v10 = vadd.f32 %v2210_v45, %v2111_v42 }
 0x451   : > { %v2180_v41 = vpop.permute.xlu1 %2179 }
 0x452   : > { %2238 = vxpose.xlu0.b32.cont [5/16] (narrow) %v2222_v0, 8  ;;  %v2213_v14 = vsel %vm2119_vm6, %v2180_v41, 0.0 }
 0x453   : > { %v2229_v51 = vadd.f32 %v2213_v14, %v2114_v15 }
 0x455   : > { %v2175_v9 = vpop.permute.xlu1 %2174 }
 0x456   : > { %2239 = vxpose.xlu0.b32.cont [6/16] (narrow) %v2223_v3, 8  ;;  %v2212_v50 = vsel %vm2119_vm6, %v2175_v9, 0.0 }
 0x457   : > { %v2228_v49 = vadd.f32 %v2212_v50, %v2113_v13 }
 0x459   : > { %v2190_v12 = vpop.permute.xlu1 %2189 }
 0x45a   : > { %2240 = vxpose.xlu0.b32.cont [7/16] (narrow) %v2224_v5, 8  ;;  %v2215_v18 = vsel %vm2119_vm6, %v2190_v12, 0.0 }
 0x45b   : > { %v2231_v20 = vadd.f32 %v2215_v18, %v2116_v54 }
 0x45d   : > { %v2185_v52 = vpop.permute.xlu1 %2184 }
 0x45e   : > { %2241 = vxpose.xlu0.b32.cont [8/16] (narrow) %v2225_v8, 8  ;;  %v2214_v16 = vsel %vm2119_vm6, %v2185_v52, 0.0 }
 0x45f   : > { %v2230_v53 = vadd.f32 %v2214_v16, %v2115_v17 }
 0x461   : > { %v2195_v56 = vpop.permute.xlu1 %2194 }
 0x462   : > { %2242 = vxpose.xlu0.b32.cont [9/16] (narrow) %v2226_v10, 8  ;;  %v2216_v22 = vsel %vm2119_vm6, %v2195_v56, 0.0 }
 0x463   : > { %v2232_v26 = vadd.f32 %v2216_v22, %v2117_v19 }
 0x465   : > { %v2200_v23 = vpop.permute.xlu1 %2199 }
 0x466   : > { %2243 = vxpose.xlu0.b32.cont [10/16] (narrow) %v2227_v47, 8  ;;  %v2217_v27 = vsel %vm2119_vm6, %v2200_v23, 0.0 }
 0x467   : > { %v2233_v28 = vadd.f32 %v2217_v27, %v2118_v55 }
 0x46a   : > { %2244 = vxpose.xlu0.b32.cont [11/16] (narrow) %v2228_v49, 8 }
 0x46e   : > { %2245 = vxpose.xlu0.b32.cont [12/16] (narrow) %v2229_v51, 8 }
 0x472   : > { %2246 = vxpose.xlu0.b32.cont [13/16] (narrow) %v2230_v53, 8 }
 0x476   : > { %2247 = vxpose.xlu0.b32.cont [14/16] (narrow) %v2231_v20, 8 }
 0x47a   : > { %2248 = vxpose.xlu0.b32.cont [15/16] (narrow) %v2232_v26, 8 }
 0x47e   : > { %2249 = vxpose.xlu0.b32.end [16/16] (narrow) %v2233_v28, 8 }
 0x4c2   : > { %v2250_v24 = vpop.trf.xlu0 }
 0x4c3   : > { %2266 = vst [vmem:[%s342_s28] sm:$0x3] %v2250_v24 }
 0x4c4   : > { %3035 = shalt.err (!%p3032_p3)
}
 0x4c5   : > { %s3036_s26 = scalar_lea.hbm %s3699_s17, 32  ;;  %s3040_s23 = scalar_lea.hbm %s3748_s9, 64 }
 0x4c6   : > { %p3037_p4 = scmp.ne.s32.totalorder %s3699_s17, %s3036_s26  ;;  %p3041_p9 = scmp.lt.u32.totalorder %s3699_s17, %s3748_s9 }
 0x4c7   : > { %p3042_p10 = scmp.lt.u32.totalorder %s3040_s23, %s3036_s26  ;;  %p3044_p12 = scmp.lt.u32.totalorder %s3036_s26, %s3699_s17 }
 0x4c8   : > { %p3038_p7 = pnand %p3037_p4, %p3177_p5 }
 0x4c9   : > { %p3043_p11 = por %p3042_p10, %p3041_p9 }
 0x4ca   : > { %p3039_p8 = pneg %p3038_p7 }
 0x4cb   : > { %p3045_p13 = por %p3044_p12, %p3043_p11 }
 0x4cd   : > { %p3046_p0 = pnand %p3045_p13, %p3039_p8 }
 0x4cf   : > { %3049 = shalt.err (!%p3046_p0)
}
 0x4d0   : > { %2979 = dma.vmem_to_hbm [thread:$0]  (%p3177_p5), %s3694_s29, 32, %s3699_s17, %s2268_s21  }
 0x4d1 PF: > { %p2985_p1 = scmp.ge.s32.totalorder %s3084_s12, 2  ;;  %s2293_s22 = sand.u32 1, %s3072_s30  }
 0x4d2   : > { %s2294_s24 = scalar_lea.sflag [#allocation3], %s2293_s22 }
 0x4d3   : > { %p2982_p2 = pnand %p2985_p1, %p3181_p6 }
 0x4d5   : > { %3067 = dma.done.wait (!%p2982_p2), %s2294_s24, 32  }
 0x4d6   : > { %3069 = vsyncadd (!%p2982_p2), %s2294_s24, 4294967264  ;;  %p19_p3 = scmp.ge.s32.totalorder %s3164_s15, 4   ;;  %s3753_s30 = smov %s3076_s10 }
 0x4d7   : > { %s3754_s10 = smov %s3080_s11  ;;  %s3755_s11 = smov %s3175_s18 }
 0x4d8   : > { %s3756_s12 = smov %s3164_s15  ;;  %21 = sbr.rel (!%p19_p3) target bundleno = 3 (0x3), region = 101 }
 0x4df   :  { %2299 = vsyncpa [#allocation3], 1 }
 0x4e0   :  { %2301 = vsyncpa [#allocation3 + $0x1], 1 }

</bundles_post_ra>
